<compile_context>
chip_gen: v7x
topology: tpu7x:2x2x1
jax: 0.10.0
libtpu: 0.0.40
codegen_flags: <defaults>
</compile_context>

<pallas_src>
import jax
import jax.numpy as jnp
import numpy as np
from jax.experimental import pallas as pl
from jax.experimental.pallas import tpu as pltpu

# ---------------- config (small, consistent with the module) ----------------
VOCAB = 128
N_EMBED = 32
N_HEAD = 4
HEAD_DIM = N_EMBED // N_HEAD
ROTARY_DIM = N_EMBED          # must equal n_embed for `x + position_embeddings`
N_LAYER = 2
BLOCK_SIZE = 16
B, T = 2, 8
BT = B * T                    # 16 token rows
BHT = N_HEAD * BT             # 64 packed (head, batch, time) rows

LN_EPS = 1e-5

# Layout of the packed "vecs" VMEM buffer (rows of width N_EMBED):
#   rows [0, BT)                      : position embeddings (rotary table, tiled per batch)
#   per layer l: 3 rows               : ln_g, ln_b, b_proj
#   last 2 rows                       : ln_f gamma, ln_f beta
_POS_ROWS = BT
_VEC_ROWS_PER_LAYER = 3
_LNF_ROW = _POS_ROWS + _VEC_ROWS_PER_LAYER * N_LAYER
_VECS_ROWS = _LNF_ROW + 2


# ------------------------------ fused kernel ---------------------------------
def _layer_norm(x, g, b):
    mean = jnp.mean(x, axis=-1, keepdims=True)
    var = jnp.mean(jnp.square(x - mean), axis=-1, keepdims=True)
    return (x - mean) * jax.lax.rsqrt(var + LN_EPS) * g + b


def _gptj_fwd_kernel(idx_ref, tok_ref, vecs_ref, b_fc_ref, mask_ref,
                     w_in_ref, w_op_ref, head_w_ref, logits_ref):
    D, H, Dh = N_EMBED, N_HEAD, HEAD_DIM

    # ---- in-kernel embedding gather + position add (dropout == identity) ----
    # idx lives in SMEM; each token row is a dynamic single-sublane VMEM load.
    rows = [tok_ref[pl.ds(idx_ref[i], 1), :] for i in range(BT)]
    x = jnp.concatenate(rows, axis=0) + vecs_ref[0:BT, :]          # (BT, D) f32

    # Precomputed additive mask: 0 where (same batch & head) AND causal, else -1e30.
    mask_bias = mask_ref[...]                                      # (BHT, BHT) f32

    for l in range(N_LAYER):
        base = _POS_ROWS + _VEC_ROWS_PER_LAYER * l
        ln_g = vecs_ref[base:base + 1, :]                          # (1, D)
        ln_b = vecs_ref[base + 1:base + 2, :]
        b_proj = vecs_ref[base + 2:base + 3, :]
        b_fc = b_fc_ref[l:l + 1, :]                                # (1, 4D)

        h = _layer_norm(x, ln_g, ln_b)                             # (BT, D) f32
        h16 = h.astype(jnp.bfloat16)

        # Two aligned MXU pushes sharing the LN output:
        #   ff  = h @ w_fc   -> full 128-lane result (no sub-vreg extraction)
        #   qkv = h @ w_qkv  -> 96 lanes [q | k | v], 1/sqrt(Dh) folded into w_q
        ff = jnp.dot(h16, w_in_ref[l, :, 0:4 * D],
                     preferred_element_type=jnp.float32) + b_fc    # (BT, 4D)
        qkv = jnp.dot(h16, w_in_ref[l, :, 4 * D:7 * D],
                      preferred_element_type=jnp.float32)          # (BT, 3D)

        # Head-major packing: row index = (head, batch, time) -> (BHT, Dh).
        qp = jnp.concatenate(
            [qkv[:, hd * Dh:(hd + 1) * Dh] for hd in range(H)], axis=0)
        kp = jnp.concatenate(
            [qkv[:, D + hd * Dh:D + (hd + 1) * Dh] for hd in range(H)], axis=0)
        vp = jnp.concatenate(
            [qkv[:, 2 * D + hd * Dh:2 * D + (hd + 1) * Dh] for hd in range(H)],
            axis=0)

        # One masked score matmul + one softmax + one PV matmul for ALL heads.
        s = jax.lax.dot_general(
            qp.astype(jnp.bfloat16), kp.astype(jnp.bfloat16),
            (((1,), (1,)), ((), ())),
            preferred_element_type=jnp.float32)                    # (BHT, BHT)
        s = s + mask_bias
        s = s - jnp.max(s, axis=-1, keepdims=True)
        p = jnp.exp(s)
        p = p * pl.reciprocal(jnp.sum(p, axis=-1, keepdims=True), approx=True)

        o = jnp.dot(p.astype(jnp.bfloat16), vp.astype(jnp.bfloat16),
                    preferred_element_type=jnp.float32)            # (BHT, Dh)

        # Unpack heads back to (BT, D): per-head sublane slices, one lane concat.
        attn = jnp.concatenate(
            [o[hd * BT:(hd + 1) * BT, :] for hd in range(H)], axis=1)

        # MLP branch (GPT-J tanh gelu), then one fused residual-branch matmul:
        #   [a | attn] @ [w_proj ; w_o]   (mlp_out + attn_out in one MXU drain)
        a = jax.nn.gelu(ff, approximate=True)
        branch = jnp.concatenate(
            [a.astype(jnp.bfloat16), attn.astype(jnp.bfloat16)], axis=1)
        out = jnp.dot(branch, w_op_ref[l],
                      preferred_element_type=jnp.float32)          # (BT, D)

        # Parallel residual.
        x = x + out + b_proj

    lnf_g = vecs_ref[_LNF_ROW:_LNF_ROW + 1, :]
    lnf_b = vecs_ref[_LNF_ROW + 1:_LNF_ROW + 2, :]
    xf = _layer_norm(x, lnf_g, lnf_b).astype(jnp.bfloat16)
    # (BT, VOCAB=128): lane-dense output -> unmasked stores.
    logits_ref[...] = jnp.dot(xf, head_w_ref[...],
                              preferred_element_type=jnp.float32)


# ------------------------------ model wrapper ---------------------------------
def rotary_pos_emb(t, dim):
    """RotaryEmbedding.forward(t): cat(freqs, freqs) -> (t, dim)."""
    inv_freq = 1.0 / (10000.0 ** (np.arange(0, dim, 2, dtype=np.float32) / dim))
    seq = np.arange(t, dtype=np.float32)
    freqs = np.einsum("i,j->ij", seq, inv_freq)
    return np.concatenate([freqs, freqs], axis=-1).astype(np.float32)


def init_params(key):
    """Build parameters already packed into the few buffers the kernel takes."""
    ks = jax.random.split(key, 2 + N_LAYER)
    std = 0.02
    qscale = 1.0 / (HEAD_DIM ** 0.5)        # folded into the q weights

    pos = np.tile(rotary_pos_emb(T, ROTARY_DIM), (B, 1))          # (BT, D)
    vec_rows = [jnp.asarray(pos, jnp.float32)]
    w_in_l, w_op_l, b_fc_l = [], [], []

    for layer in range(N_LAYER):
        kq, kk, kv, ko, kf, kp = jax.random.split(ks[2 + layer], 6)
        w_q = std * qscale * jax.random.normal(kq, (N_EMBED, N_EMBED), jnp.float32)
        w_k = std * jax.random.normal(kk, (N_EMBED, N_EMBED), jnp.float32)
        w_v = std * jax.random.normal(kv, (N_EMBED, N_EMBED), jnp.float32)
        w_fc = std * jax.random.normal(kf, (N_EMBED, 4 * N_EMBED), jnp.float32)
        w_o = std * jax.random.normal(ko, (N_EMBED, N_EMBED), jnp.float32)
        w_proj = std * jax.random.normal(kp, (4 * N_EMBED, N_EMBED), jnp.float32)

        w_in_l.append(jnp.concatenate([w_fc, w_q, w_k, w_v], axis=-1))  # (D, 7D)
        w_op_l.append(jnp.concatenate([w_proj, w_o], axis=0))           # (5D, D)
        vec_rows.append(jnp.ones((1, N_EMBED), jnp.float32))            # ln_g
        vec_rows.append(jnp.zeros((1, N_EMBED), jnp.float32))           # ln_b
        vec_rows.append(jnp.zeros((1, N_EMBED), jnp.float32))           # b_proj
        b_fc_l.append(jnp.zeros((1, 4 * N_EMBED), jnp.float32))

    vec_rows.append(jnp.ones((1, N_EMBED), jnp.float32))                # ln_f g
    vec_rows.append(jnp.zeros((1, N_EMBED), jnp.float32))               # ln_f b

    # Additive attention mask for head-major packed rows i = (head*B + b)*T + t:
    # valid iff same (head, batch) block AND causal.
    ii = np.arange(BHT)[:, None]
    jj = np.arange(BHT)[None, :]
    valid = ((ii // T) == (jj // T)) & ((jj % T) <= (ii % T))
    mask = jnp.asarray(np.where(valid, 0.0, -1e30).astype(np.float32))

    return {
        "tok_emb": std * jax.random.normal(ks[0], (VOCAB, N_EMBED), jnp.float32),
        "vecs": jnp.concatenate(vec_rows, axis=0),                  # (24, D) f32
        "b_fc": jnp.concatenate(b_fc_l, axis=0),                    # (L, 4D) f32
        "mask": mask,                                               # (64, 64) f32
        "w_in": jnp.stack(w_in_l).astype(jnp.bfloat16),             # (L, D, 7D)
        "w_op": jnp.stack(w_op_l).astype(jnp.bfloat16),             # (L, 5D, D)
        "head_w": (std * jax.random.normal(ks[1], (N_EMBED, VOCAB), jnp.float32)
                   ).astype(jnp.bfloat16),                          # (D, V)
    }


@jax.jit
def gptj_forward(idx, params):
    b, t = idx.shape            # static under jit
    smem = pl.BlockSpec(memory_space=pltpu.MemorySpace.SMEM)
    vmem = pl.BlockSpec(memory_space=pltpu.MemorySpace.VMEM)
    args = (idx.reshape(-1).astype(jnp.int32),
            params["tok_emb"], params["vecs"], params["b_fc"], params["mask"],
            params["w_in"], params["w_op"], params["head_w"])
    logits = pl.pallas_call(
        _gptj_fwd_kernel,
        out_shape=jax.ShapeDtypeStruct((b * t, VOCAB), jnp.float32),
        in_specs=[smem] + [vmem] * (len(args) - 1),
        out_specs=vmem,
    )(*args)
    return logits.reshape(b, t, VOCAB)      # loss = None (no targets)


if __name__ == "__main__":
    key = jax.random.PRNGKey(0)
    k_param, k_idx = jax.random.split(key)
    params = init_params(k_param)
    idx = jax.random.randint(k_idx, (B, T), 0, VOCAB, dtype=jnp.int32)

    logits = jax.block_until_ready(gptj_forward(idx, params))

    assert logits.shape == (B, T, VOCAB)
    assert bool(jnp.all(jnp.isfinite(logits)))
    print("KERNEL_OK")
</pallas_src>

<mosaic_0001>
module attributes {stable_mosaic.version = 11 : i64} {
  func.func @_gptj_fwd_kernel(%arg0: memref<16xi32, #tpu.memory_space<smem>>, %arg1: memref<128x32xf32, #tpu.memory_space<vmem>>, %arg2: memref<24x32xf32, #tpu.memory_space<vmem>>, %arg3: memref<2x128xf32, #tpu.memory_space<vmem>>, %arg4: memref<64x64xf32, #tpu.memory_space<vmem>>, %arg5: memref<2x32x224xbf16, #tpu.memory_space<vmem>>, %arg6: memref<2x160x32xbf16, #tpu.memory_space<vmem>>, %arg7: memref<32x128xbf16, #tpu.memory_space<vmem>>, %arg8: memref<16x128xf32, #tpu.memory_space<vmem>>) attributes {dimension_semantics = [], scalar_prefetch = 0 : i64, scratch_operands = 0 : i64, tpu.core_type = #tpu.core_type<tc>} {
    %c0 = arith.constant 0 : index
    %0 = memref.load %arg0[%c0] : memref<16xi32, #tpu.memory_space<smem>>
    %1 = arith.index_cast %0 : i32 to index
    %c0_0 = arith.constant 0 : index
    %2 = vector.load %arg1[%1, %c0_0] : memref<128x32xf32, #tpu.memory_space<vmem>>, vector<1x32xf32>
    %c1 = arith.constant 1 : index
    %3 = memref.load %arg0[%c1] : memref<16xi32, #tpu.memory_space<smem>>
    %4 = arith.index_cast %3 : i32 to index
    %c0_1 = arith.constant 0 : index
    %5 = vector.load %arg1[%4, %c0_1] : memref<128x32xf32, #tpu.memory_space<vmem>>, vector<1x32xf32>
    %c2 = arith.constant 2 : index
    %6 = memref.load %arg0[%c2] : memref<16xi32, #tpu.memory_space<smem>>
    %7 = arith.index_cast %6 : i32 to index
    %c0_2 = arith.constant 0 : index
    %8 = vector.load %arg1[%7, %c0_2] : memref<128x32xf32, #tpu.memory_space<vmem>>, vector<1x32xf32>
    %c3 = arith.constant 3 : index
    %9 = memref.load %arg0[%c3] : memref<16xi32, #tpu.memory_space<smem>>
    %10 = arith.index_cast %9 : i32 to index
    %c0_3 = arith.constant 0 : index
    %11 = vector.load %arg1[%10, %c0_3] : memref<128x32xf32, #tpu.memory_space<vmem>>, vector<1x32xf32>
    %c4 = arith.constant 4 : index
    %12 = memref.load %arg0[%c4] : memref<16xi32, #tpu.memory_space<smem>>
    %13 = arith.index_cast %12 : i32 to index
    %c0_4 = arith.constant 0 : index
    %14 = vector.load %arg1[%13, %c0_4] : memref<128x32xf32, #tpu.memory_space<vmem>>, vector<1x32xf32>
    %c5 = arith.constant 5 : index
    %15 = memref.load %arg0[%c5] : memref<16xi32, #tpu.memory_space<smem>>
    %16 = arith.index_cast %15 : i32 to index
    %c0_5 = arith.constant 0 : index
    %17 = vector.load %arg1[%16, %c0_5] : memref<128x32xf32, #tpu.memory_space<vmem>>, vector<1x32xf32>
    %c6 = arith.constant 6 : index
    %18 = memref.load %arg0[%c6] : memref<16xi32, #tpu.memory_space<smem>>
    %19 = arith.index_cast %18 : i32 to index
    %c0_6 = arith.constant 0 : index
    %20 = vector.load %arg1[%19, %c0_6] : memref<128x32xf32, #tpu.memory_space<vmem>>, vector<1x32xf32>
    %c7 = arith.constant 7 : index
    %21 = memref.load %arg0[%c7] : memref<16xi32, #tpu.memory_space<smem>>
    %22 = arith.index_cast %21 : i32 to index
    %c0_7 = arith.constant 0 : index
    %23 = vector.load %arg1[%22, %c0_7] : memref<128x32xf32, #tpu.memory_space<vmem>>, vector<1x32xf32>
    %c8 = arith.constant 8 : index
    %24 = memref.load %arg0[%c8] : memref<16xi32, #tpu.memory_space<smem>>
    %25 = arith.index_cast %24 : i32 to index
    %c0_8 = arith.constant 0 : index
    %26 = vector.load %arg1[%25, %c0_8] : memref<128x32xf32, #tpu.memory_space<vmem>>, vector<1x32xf32>
    %c9 = arith.constant 9 : index
    %27 = memref.load %arg0[%c9] : memref<16xi32, #tpu.memory_space<smem>>
    %28 = arith.index_cast %27 : i32 to index
    %c0_9 = arith.constant 0 : index
    %29 = vector.load %arg1[%28, %c0_9] : memref<128x32xf32, #tpu.memory_space<vmem>>, vector<1x32xf32>
    %c10 = arith.constant 10 : index
    %30 = memref.load %arg0[%c10] : memref<16xi32, #tpu.memory_space<smem>>
    %31 = arith.index_cast %30 : i32 to index
    %c0_10 = arith.constant 0 : index
    %32 = vector.load %arg1[%31, %c0_10] : memref<128x32xf32, #tpu.memory_space<vmem>>, vector<1x32xf32>
    %c11 = arith.constant 11 : index
    %33 = memref.load %arg0[%c11] : memref<16xi32, #tpu.memory_space<smem>>
    %34 = arith.index_cast %33 : i32 to index
    %c0_11 = arith.constant 0 : index
    %35 = vector.load %arg1[%34, %c0_11] : memref<128x32xf32, #tpu.memory_space<vmem>>, vector<1x32xf32>
    %c12 = arith.constant 12 : index
    %36 = memref.load %arg0[%c12] : memref<16xi32, #tpu.memory_space<smem>>
    %37 = arith.index_cast %36 : i32 to index
    %c0_12 = arith.constant 0 : index
    %38 = vector.load %arg1[%37, %c0_12] : memref<128x32xf32, #tpu.memory_space<vmem>>, vector<1x32xf32>
    %c13 = arith.constant 13 : index
    %39 = memref.load %arg0[%c13] : memref<16xi32, #tpu.memory_space<smem>>
    %40 = arith.index_cast %39 : i32 to index
    %c0_13 = arith.constant 0 : index
    %41 = vector.load %arg1[%40, %c0_13] : memref<128x32xf32, #tpu.memory_space<vmem>>, vector<1x32xf32>
    %c14 = arith.constant 14 : index
    %42 = memref.load %arg0[%c14] : memref<16xi32, #tpu.memory_space<smem>>
    %43 = arith.index_cast %42 : i32 to index
    %c0_14 = arith.constant 0 : index
    %44 = vector.load %arg1[%43, %c0_14] : memref<128x32xf32, #tpu.memory_space<vmem>>, vector<1x32xf32>
    %c15 = arith.constant 15 : index
    %45 = memref.load %arg0[%c15] : memref<16xi32, #tpu.memory_space<smem>>
    %46 = arith.index_cast %45 : i32 to index
    %c0_15 = arith.constant 0 : index
    %47 = vector.load %arg1[%46, %c0_15] : memref<128x32xf32, #tpu.memory_space<vmem>>, vector<1x32xf32>
    %48 = tpu.concatenate %2, %5, %8, %11, %14, %17, %20, %23, %26, %29, %32, %35, %38, %41, %44, %47 in 0 : vector<1x32xf32>, vector<1x32xf32>, vector<1x32xf32>, vector<1x32xf32>, vector<1x32xf32>, vector<1x32xf32>, vector<1x32xf32>, vector<1x32xf32>, vector<1x32xf32>, vector<1x32xf32>, vector<1x32xf32>, vector<1x32xf32>, vector<1x32xf32>, vector<1x32xf32>, vector<1x32xf32>, vector<1x32xf32> -> vector<16x32xf32>
    %c0_16 = arith.constant 0 : index
    %c0_17 = arith.constant 0 : index
    %49 = vector.load %arg2[%c0_16, %c0_17] : memref<24x32xf32, #tpu.memory_space<vmem>>, vector<16x32xf32>
    %50 = arith.addf %48, %49 : vector<16x32xf32>
    %c0_18 = arith.constant 0 : index
    %c0_19 = arith.constant 0 : index
    %51 = vector.load %arg4[%c0_18, %c0_19] : memref<64x64xf32, #tpu.memory_space<vmem>>, vector<64x64xf32>
    %c16 = arith.constant 16 : index
    %c0_20 = arith.constant 0 : index
    %52 = vector.load %arg2[%c16, %c0_20] : memref<24x32xf32, #tpu.memory_space<vmem>>, vector<1x32xf32>
    %c17 = arith.constant 17 : index
    %c0_21 = arith.constant 0 : index
    %53 = vector.load %arg2[%c17, %c0_21] : memref<24x32xf32, #tpu.memory_space<vmem>>, vector<1x32xf32>
    %c18 = arith.constant 18 : index
    %c0_22 = arith.constant 0 : index
    %54 = vector.load %arg2[%c18, %c0_22] : memref<24x32xf32, #tpu.memory_space<vmem>>, vector<1x32xf32>
    %c0_23 = arith.constant 0 : index
    %c0_24 = arith.constant 0 : index
    %55 = vector.load %arg3[%c0_23, %c0_24] : memref<2x128xf32, #tpu.memory_space<vmem>>, vector<1x128xf32>
    %cst = arith.constant dense<0.000000e+00> : vector<16xf32>
    %56 = vector.multi_reduction <add>, %50, %cst [1] : vector<16x32xf32> to vector<16xf32>
    %57 = vector.shape_cast %56 : vector<16xf32> to vector<16x1xf32>
    %cst_25 = arith.constant 3.200000e+01 : f32
    %58 = vector.broadcast %cst_25 : f32 to vector<16x1xf32>
    %59 = arith.divf %57, %58 : vector<16x1xf32>
    %60 = vector.broadcast %59 : vector<16x1xf32> to vector<16x32xf32>
    %61 = arith.subf %50, %60 : vector<16x32xf32>
    %62 = arith.mulf %61, %61 : vector<16x32xf32>
    %cst_26 = arith.constant dense<0.000000e+00> : vector<16xf32>
    %63 = vector.multi_reduction <add>, %62, %cst_26 [1] : vector<16x32xf32> to vector<16xf32>
    %64 = vector.shape_cast %63 : vector<16xf32> to vector<16x1xf32>
    %cst_27 = arith.constant 3.200000e+01 : f32
    %65 = vector.broadcast %cst_27 : f32 to vector<16x1xf32>
    %66 = arith.divf %64, %65 : vector<16x1xf32>
    %67 = vector.broadcast %59 : vector<16x1xf32> to vector<16x32xf32>
    %68 = arith.subf %50, %67 : vector<16x32xf32>
    %cst_28 = arith.constant 9.99999974E-6 : f32
    %69 = vector.broadcast %cst_28 : f32 to vector<16x1xf32>
    %70 = arith.addf %66, %69 : vector<16x1xf32>
    %71 = math.rsqrt %70 : vector<16x1xf32>
    %72 = vector.broadcast %71 : vector<16x1xf32> to vector<16x32xf32>
    %73 = arith.mulf %68, %72 : vector<16x32xf32>
    %74 = vector.broadcast %52 : vector<1x32xf32> to vector<16x32xf32>
    %75 = arith.mulf %73, %74 : vector<16x32xf32>
    %76 = vector.broadcast %53 : vector<1x32xf32> to vector<16x32xf32>
    %77 = arith.addf %75, %76 : vector<16x32xf32>
    %78 = arith.truncf %77 : vector<16x32xf32> to vector<16x32xbf16>
    %c0_29 = arith.constant 0 : index
    %c0_30 = arith.constant 0 : index
    %c0_31 = arith.constant 0 : index
    %79 = vector.load %arg5[%c0_29, %c0_30, %c0_31] : memref<2x32x224xbf16, #tpu.memory_space<vmem>>, vector<1x32x128xbf16>
    %80 = vector.shape_cast %79 : vector<1x32x128xbf16> to vector<32x128xbf16>
    %cst_32 = arith.constant dense<0.000000e+00> : vector<16x128xf32>
    %81 = tpu.matmul %78, %80, %cst_32 {dimension_numbers = #tpu.dot_dimension_numbers<[1], [0], [0], [1], [0, 0, 1, 1], [], []>} : vector<16x32xbf16>, vector<32x128xbf16>, vector<16x128xf32> -> vector<16x128xf32>
    %82 = vector.broadcast %55 : vector<1x128xf32> to vector<16x128xf32>
    %83 = arith.addf %81, %82 : vector<16x128xf32>
    %c0_33 = arith.constant 0 : index
    %c0_34 = arith.constant 0 : index
    %c128 = arith.constant 128 : index
    %84 = vector.load %arg5[%c0_33, %c0_34, %c128] : memref<2x32x224xbf16, #tpu.memory_space<vmem>>, vector<1x32x96xbf16>
    %85 = vector.shape_cast %84 : vector<1x32x96xbf16> to vector<32x96xbf16>
    %cst_35 = arith.constant dense<0.000000e+00> : vector<16x96xf32>
    %86 = tpu.matmul %78, %85, %cst_35 {dimension_numbers = #tpu.dot_dimension_numbers<[1], [0], [0], [1], [0, 0, 1, 1], [], []>} : vector<16x32xbf16>, vector<32x96xbf16>, vector<16x96xf32> -> vector<16x96xf32>
    %87 = vector.extract_strided_slice %86 {offsets = [0, 0], sizes = [16, 8], strides = [1, 1]} : vector<16x96xf32> to vector<16x8xf32>
    %88 = vector.extract_strided_slice %86 {offsets = [0, 8], sizes = [16, 8], strides = [1, 1]} : vector<16x96xf32> to vector<16x8xf32>
    %89 = vector.extract_strided_slice %86 {offsets = [0, 16], sizes = [16, 8], strides = [1, 1]} : vector<16x96xf32> to vector<16x8xf32>
    %90 = vector.extract_strided_slice %86 {offsets = [0, 24], sizes = [16, 8], strides = [1, 1]} : vector<16x96xf32> to vector<16x8xf32>
    %91 = tpu.concatenate %87, %88, %89, %90 in 0 : vector<16x8xf32>, vector<16x8xf32>, vector<16x8xf32>, vector<16x8xf32> -> vector<64x8xf32>
    %92 = vector.extract_strided_slice %86 {offsets = [0, 32], sizes = [16, 8], strides = [1, 1]} : vector<16x96xf32> to vector<16x8xf32>
    %93 = vector.extract_strided_slice %86 {offsets = [0, 40], sizes = [16, 8], strides = [1, 1]} : vector<16x96xf32> to vector<16x8xf32>
    %94 = vector.extract_strided_slice %86 {offsets = [0, 48], sizes = [16, 8], strides = [1, 1]} : vector<16x96xf32> to vector<16x8xf32>
    %95 = vector.extract_strided_slice %86 {offsets = [0, 56], sizes = [16, 8], strides = [1, 1]} : vector<16x96xf32> to vector<16x8xf32>
    %96 = tpu.concatenate %92, %93, %94, %95 in 0 : vector<16x8xf32>, vector<16x8xf32>, vector<16x8xf32>, vector<16x8xf32> -> vector<64x8xf32>
    %97 = vector.extract_strided_slice %86 {offsets = [0, 64], sizes = [16, 8], strides = [1, 1]} : vector<16x96xf32> to vector<16x8xf32>
    %98 = vector.extract_strided_slice %86 {offsets = [0, 72], sizes = [16, 8], strides = [1, 1]} : vector<16x96xf32> to vector<16x8xf32>
    %99 = vector.extract_strided_slice %86 {offsets = [0, 80], sizes = [16, 8], strides = [1, 1]} : vector<16x96xf32> to vector<16x8xf32>
    %100 = vector.extract_strided_slice %86 {offsets = [0, 88], sizes = [16, 8], strides = [1, 1]} : vector<16x96xf32> to vector<16x8xf32>
    %101 = tpu.concatenate %97, %98, %99, %100 in 0 : vector<16x8xf32>, vector<16x8xf32>, vector<16x8xf32>, vector<16x8xf32> -> vector<64x8xf32>
    %102 = arith.truncf %91 : vector<64x8xf32> to vector<64x8xbf16>
    %103 = arith.truncf %96 : vector<64x8xf32> to vector<64x8xbf16>
    %cst_36 = arith.constant dense<0.000000e+00> : vector<64x64xf32>
    %104 = tpu.matmul %102, %103, %cst_36 {dimension_numbers = #tpu.dot_dimension_numbers<[1], [1], [0], [0], [0, 0, 1, 0], [], []>} : vector<64x8xbf16>, vector<64x8xbf16>, vector<64x64xf32> -> vector<64x64xf32>
    %105 = arith.addf %104, %51 : vector<64x64xf32>
    %cst_37 = arith.constant dense<0xFF800000> : vector<64xf32>
    %106 = vector.multi_reduction <maximumf>, %105, %cst_37 [1] : vector<64x64xf32> to vector<64xf32>
    %107 = vector.shape_cast %106 : vector<64xf32> to vector<64x1xf32>
    %108 = vector.broadcast %107 : vector<64x1xf32> to vector<64x64xf32>
    %109 = arith.subf %105, %108 : vector<64x64xf32>
    %110 = math.exp %109 : vector<64x64xf32>
    %cst_38 = arith.constant dense<0.000000e+00> : vector<64xf32>
    %111 = vector.multi_reduction <add>, %110, %cst_38 [1] : vector<64x64xf32> to vector<64xf32>
    %112 = vector.shape_cast %111 : vector<64xf32> to vector<64x1xf32>
    %113 = tpu.reciprocal %112 {approx = true} : vector<64x1xf32> -> vector<64x1xf32>
    %114 = vector.broadcast %113 : vector<64x1xf32> to vector<64x64xf32>
    %115 = arith.mulf %110, %114 : vector<64x64xf32>
    %116 = arith.truncf %115 : vector<64x64xf32> to vector<64x64xbf16>
    %117 = arith.truncf %101 : vector<64x8xf32> to vector<64x8xbf16>
    %cst_39 = arith.constant dense<0.000000e+00> : vector<64x8xf32>
    %118 = tpu.matmul %116, %117, %cst_39 {dimension_numbers = #tpu.dot_dimension_numbers<[1], [0], [0], [1], [0, 0, 1, 1], [], []>} : vector<64x64xbf16>, vector<64x8xbf16>, vector<64x8xf32> -> vector<64x8xf32>
    %119 = vector.extract_strided_slice %118 {offsets = [0, 0], sizes = [16, 8], strides = [1, 1]} : vector<64x8xf32> to vector<16x8xf32>
    %120 = vector.extract_strided_slice %118 {offsets = [16, 0], sizes = [16, 8], strides = [1, 1]} : vector<64x8xf32> to vector<16x8xf32>
    %121 = vector.extract_strided_slice %118 {offsets = [32, 0], sizes = [16, 8], strides = [1, 1]} : vector<64x8xf32> to vector<16x8xf32>
    %122 = vector.extract_strided_slice %118 {offsets = [48, 0], sizes = [16, 8], strides = [1, 1]} : vector<64x8xf32> to vector<16x8xf32>
    %123 = tpu.concatenate %119, %120, %121, %122 in 1 : vector<16x8xf32>, vector<16x8xf32>, vector<16x8xf32>, vector<16x8xf32> -> vector<16x32xf32>
    %124 = arith.mulf %83, %83 : vector<16x128xf32>
    %125 = arith.mulf %83, %124 : vector<16x128xf32>
    %cst_40 = arith.constant 4.471500e-02 : f32
    %126 = vector.broadcast %cst_40 : f32 to vector<16x128xf32>
    %127 = arith.mulf %126, %125 : vector<16x128xf32>
    %128 = arith.addf %83, %127 : vector<16x128xf32>
    %cst_41 = arith.constant 0.797884583 : f32
    %129 = vector.broadcast %cst_41 : f32 to vector<16x128xf32>
    %130 = arith.mulf %129, %128 : vector<16x128xf32>
    %131 = math.tanh %130 : vector<16x128xf32>
    %cst_42 = arith.constant 1.000000e+00 : f32
    %132 = vector.broadcast %cst_42 : f32 to vector<16x128xf32>
    %133 = arith.addf %132, %131 : vector<16x128xf32>
    %cst_43 = arith.constant 5.000000e-01 : f32
    %134 = vector.broadcast %cst_43 : f32 to vector<16x128xf32>
    %135 = arith.mulf %134, %133 : vector<16x128xf32>
    %136 = arith.mulf %83, %135 : vector<16x128xf32>
    %137 = arith.truncf %136 : vector<16x128xf32> to vector<16x128xbf16>
    %138 = arith.truncf %123 : vector<16x32xf32> to vector<16x32xbf16>
    %139 = tpu.concatenate %137, %138 in 1 : vector<16x128xbf16>, vector<16x32xbf16> -> vector<16x160xbf16>
    %c0_44 = arith.constant 0 : index
    %c0_45 = arith.constant 0 : index
    %c0_46 = arith.constant 0 : index
    %140 = vector.load %arg6[%c0_44, %c0_45, %c0_46] : memref<2x160x32xbf16, #tpu.memory_space<vmem>>, vector<1x160x32xbf16>
    %141 = vector.shape_cast %140 : vector<1x160x32xbf16> to vector<160x32xbf16>
    %cst_47 = arith.constant dense<0.000000e+00> : vector<16x32xf32>
    %142 = tpu.matmul %139, %141, %cst_47 {dimension_numbers = #tpu.dot_dimension_numbers<[1], [0], [0], [1], [0, 0, 1, 1], [], []>} : vector<16x160xbf16>, vector<160x32xbf16>, vector<16x32xf32> -> vector<16x32xf32>
    %143 = arith.addf %50, %142 : vector<16x32xf32>
    %144 = vector.broadcast %54 : vector<1x32xf32> to vector<16x32xf32>
    %145 = arith.addf %143, %144 : vector<16x32xf32>
    %c19 = arith.constant 19 : index
    %c0_48 = arith.constant 0 : index
    %146 = vector.load %arg2[%c19, %c0_48] : memref<24x32xf32, #tpu.memory_space<vmem>>, vector<1x32xf32>
    %c20 = arith.constant 20 : index
    %c0_49 = arith.constant 0 : index
    %147 = vector.load %arg2[%c20, %c0_49] : memref<24x32xf32, #tpu.memory_space<vmem>>, vector<1x32xf32>
    %c21 = arith.constant 21 : index
    %c0_50 = arith.constant 0 : index
    %148 = vector.load %arg2[%c21, %c0_50] : memref<24x32xf32, #tpu.memory_space<vmem>>, vector<1x32xf32>
    %c1_51 = arith.constant 1 : index
    %c0_52 = arith.constant 0 : index
    %149 = vector.load %arg3[%c1_51, %c0_52] : memref<2x128xf32, #tpu.memory_space<vmem>>, vector<1x128xf32>
    %cst_53 = arith.constant dense<0.000000e+00> : vector<16xf32>
    %150 = vector.multi_reduction <add>, %145, %cst_53 [1] : vector<16x32xf32> to vector<16xf32>
    %151 = vector.shape_cast %150 : vector<16xf32> to vector<16x1xf32>
    %cst_54 = arith.constant 3.200000e+01 : f32
    %152 = vector.broadcast %cst_54 : f32 to vector<16x1xf32>
    %153 = arith.divf %151, %152 : vector<16x1xf32>
    %154 = vector.broadcast %153 : vector<16x1xf32> to vector<16x32xf32>
    %155 = arith.subf %145, %154 : vector<16x32xf32>
    %156 = arith.mulf %155, %155 : vector<16x32xf32>
    %cst_55 = arith.constant dense<0.000000e+00> : vector<16xf32>
    %157 = vector.multi_reduction <add>, %156, %cst_55 [1] : vector<16x32xf32> to vector<16xf32>
    %158 = vector.shape_cast %157 : vector<16xf32> to vector<16x1xf32>
    %cst_56 = arith.constant 3.200000e+01 : f32
    %159 = vector.broadcast %cst_56 : f32 to vector<16x1xf32>
    %160 = arith.divf %158, %159 : vector<16x1xf32>
    %161 = vector.broadcast %153 : vector<16x1xf32> to vector<16x32xf32>
    %162 = arith.subf %145, %161 : vector<16x32xf32>
    %cst_57 = arith.constant 9.99999974E-6 : f32
    %163 = vector.broadcast %cst_57 : f32 to vector<16x1xf32>
    %164 = arith.addf %160, %163 : vector<16x1xf32>
    %165 = math.rsqrt %164 : vector<16x1xf32>
    %166 = vector.broadcast %165 : vector<16x1xf32> to vector<16x32xf32>
    %167 = arith.mulf %162, %166 : vector<16x32xf32>
    %168 = vector.broadcast %146 : vector<1x32xf32> to vector<16x32xf32>
    %169 = arith.mulf %167, %168 : vector<16x32xf32>
    %170 = vector.broadcast %147 : vector<1x32xf32> to vector<16x32xf32>
    %171 = arith.addf %169, %170 : vector<16x32xf32>
    %172 = arith.truncf %171 : vector<16x32xf32> to vector<16x32xbf16>
    %c1_58 = arith.constant 1 : index
    %c0_59 = arith.constant 0 : index
    %c0_60 = arith.constant 0 : index
    %173 = vector.load %arg5[%c1_58, %c0_59, %c0_60] : memref<2x32x224xbf16, #tpu.memory_space<vmem>>, vector<1x32x128xbf16>
    %174 = vector.shape_cast %173 : vector<1x32x128xbf16> to vector<32x128xbf16>
    %cst_61 = arith.constant dense<0.000000e+00> : vector<16x128xf32>
    %175 = tpu.matmul %172, %174, %cst_61 {dimension_numbers = #tpu.dot_dimension_numbers<[1], [0], [0], [1], [0, 0, 1, 1], [], []>} : vector<16x32xbf16>, vector<32x128xbf16>, vector<16x128xf32> -> vector<16x128xf32>
    %176 = vector.broadcast %149 : vector<1x128xf32> to vector<16x128xf32>
    %177 = arith.addf %175, %176 : vector<16x128xf32>
    %c1_62 = arith.constant 1 : index
    %c0_63 = arith.constant 0 : index
    %c128_64 = arith.constant 128 : index
    %178 = vector.load %arg5[%c1_62, %c0_63, %c128_64] : memref<2x32x224xbf16, #tpu.memory_space<vmem>>, vector<1x32x96xbf16>
    %179 = vector.shape_cast %178 : vector<1x32x96xbf16> to vector<32x96xbf16>
    %cst_65 = arith.constant dense<0.000000e+00> : vector<16x96xf32>
    %180 = tpu.matmul %172, %179, %cst_65 {dimension_numbers = #tpu.dot_dimension_numbers<[1], [0], [0], [1], [0, 0, 1, 1], [], []>} : vector<16x32xbf16>, vector<32x96xbf16>, vector<16x96xf32> -> vector<16x96xf32>
    %181 = vector.extract_strided_slice %180 {offsets = [0, 0], sizes = [16, 8], strides = [1, 1]} : vector<16x96xf32> to vector<16x8xf32>
    %182 = vector.extract_strided_slice %180 {offsets = [0, 8], sizes = [16, 8], strides = [1, 1]} : vector<16x96xf32> to vector<16x8xf32>
    %183 = vector.extract_strided_slice %180 {offsets = [0, 16], sizes = [16, 8], strides = [1, 1]} : vector<16x96xf32> to vector<16x8xf32>
    %184 = vector.extract_strided_slice %180 {offsets = [0, 24], sizes = [16, 8], strides = [1, 1]} : vector<16x96xf32> to vector<16x8xf32>
    %185 = tpu.concatenate %181, %182, %183, %184 in 0 : vector<16x8xf32>, vector<16x8xf32>, vector<16x8xf32>, vector<16x8xf32> -> vector<64x8xf32>
    %186 = vector.extract_strided_slice %180 {offsets = [0, 32], sizes = [16, 8], strides = [1, 1]} : vector<16x96xf32> to vector<16x8xf32>
    %187 = vector.extract_strided_slice %180 {offsets = [0, 40], sizes = [16, 8], strides = [1, 1]} : vector<16x96xf32> to vector<16x8xf32>
    %188 = vector.extract_strided_slice %180 {offsets = [0, 48], sizes = [16, 8], strides = [1, 1]} : vector<16x96xf32> to vector<16x8xf32>
    %189 = vector.extract_strided_slice %180 {offsets = [0, 56], sizes = [16, 8], strides = [1, 1]} : vector<16x96xf32> to vector<16x8xf32>
    %190 = tpu.concatenate %186, %187, %188, %189 in 0 : vector<16x8xf32>, vector<16x8xf32>, vector<16x8xf32>, vector<16x8xf32> -> vector<64x8xf32>
    %191 = vector.extract_strided_slice %180 {offsets = [0, 64], sizes = [16, 8], strides = [1, 1]} : vector<16x96xf32> to vector<16x8xf32>
    %192 = vector.extract_strided_slice %180 {offsets = [0, 72], sizes = [16, 8], strides = [1, 1]} : vector<16x96xf32> to vector<16x8xf32>
    %193 = vector.extract_strided_slice %180 {offsets = [0, 80], sizes = [16, 8], strides = [1, 1]} : vector<16x96xf32> to vector<16x8xf32>
    %194 = vector.extract_strided_slice %180 {offsets = [0, 88], sizes = [16, 8], strides = [1, 1]} : vector<16x96xf32> to vector<16x8xf32>
    %195 = tpu.concatenate %191, %192, %193, %194 in 0 : vector<16x8xf32>, vector<16x8xf32>, vector<16x8xf32>, vector<16x8xf32> -> vector<64x8xf32>
    %196 = arith.truncf %185 : vector<64x8xf32> to vector<64x8xbf16>
    %197 = arith.truncf %190 : vector<64x8xf32> to vector<64x8xbf16>
    %cst_66 = arith.constant dense<0.000000e+00> : vector<64x64xf32>
    %198 = tpu.matmul %196, %197, %cst_66 {dimension_numbers = #tpu.dot_dimension_numbers<[1], [1], [0], [0], [0, 0, 1, 0], [], []>} : vector<64x8xbf16>, vector<64x8xbf16>, vector<64x64xf32> -> vector<64x64xf32>
    %199 = arith.addf %198, %51 : vector<64x64xf32>
    %cst_67 = arith.constant dense<0xFF800000> : vector<64xf32>
    %200 = vector.multi_reduction <maximumf>, %199, %cst_67 [1] : vector<64x64xf32> to vector<64xf32>
    %201 = vector.shape_cast %200 : vector<64xf32> to vector<64x1xf32>
    %202 = vector.broadcast %201 : vector<64x1xf32> to vector<64x64xf32>
    %203 = arith.subf %199, %202 : vector<64x64xf32>
    %204 = math.exp %203 : vector<64x64xf32>
    %cst_68 = arith.constant dense<0.000000e+00> : vector<64xf32>
    %205 = vector.multi_reduction <add>, %204, %cst_68 [1] : vector<64x64xf32> to vector<64xf32>
    %206 = vector.shape_cast %205 : vector<64xf32> to vector<64x1xf32>
    %207 = tpu.reciprocal %206 {approx = true} : vector<64x1xf32> -> vector<64x1xf32>
    %208 = vector.broadcast %207 : vector<64x1xf32> to vector<64x64xf32>
    %209 = arith.mulf %204, %208 : vector<64x64xf32>
    %210 = arith.truncf %209 : vector<64x64xf32> to vector<64x64xbf16>
    %211 = arith.truncf %195 : vector<64x8xf32> to vector<64x8xbf16>
    %cst_69 = arith.constant dense<0.000000e+00> : vector<64x8xf32>
    %212 = tpu.matmul %210, %211, %cst_69 {dimension_numbers = #tpu.dot_dimension_numbers<[1], [0], [0], [1], [0, 0, 1, 1], [], []>} : vector<64x64xbf16>, vector<64x8xbf16>, vector<64x8xf32> -> vector<64x8xf32>
    %213 = vector.extract_strided_slice %212 {offsets = [0, 0], sizes = [16, 8], strides = [1, 1]} : vector<64x8xf32> to vector<16x8xf32>
    %214 = vector.extract_strided_slice %212 {offsets = [16, 0], sizes = [16, 8], strides = [1, 1]} : vector<64x8xf32> to vector<16x8xf32>
    %215 = vector.extract_strided_slice %212 {offsets = [32, 0], sizes = [16, 8], strides = [1, 1]} : vector<64x8xf32> to vector<16x8xf32>
    %216 = vector.extract_strided_slice %212 {offsets = [48, 0], sizes = [16, 8], strides = [1, 1]} : vector<64x8xf32> to vector<16x8xf32>
    %217 = tpu.concatenate %213, %214, %215, %216 in 1 : vector<16x8xf32>, vector<16x8xf32>, vector<16x8xf32>, vector<16x8xf32> -> vector<16x32xf32>
    %218 = arith.mulf %177, %177 : vector<16x128xf32>
    %219 = arith.mulf %177, %218 : vector<16x128xf32>
    %cst_70 = arith.constant 4.471500e-02 : f32
    %220 = vector.broadcast %cst_70 : f32 to vector<16x128xf32>
    %221 = arith.mulf %220, %219 : vector<16x128xf32>
    %222 = arith.addf %177, %221 : vector<16x128xf32>
    %cst_71 = arith.constant 0.797884583 : f32
    %223 = vector.broadcast %cst_71 : f32 to vector<16x128xf32>
    %224 = arith.mulf %223, %222 : vector<16x128xf32>
    %225 = math.tanh %224 : vector<16x128xf32>
    %cst_72 = arith.constant 1.000000e+00 : f32
    %226 = vector.broadcast %cst_72 : f32 to vector<16x128xf32>
    %227 = arith.addf %226, %225 : vector<16x128xf32>
    %cst_73 = arith.constant 5.000000e-01 : f32
    %228 = vector.broadcast %cst_73 : f32 to vector<16x128xf32>
    %229 = arith.mulf %228, %227 : vector<16x128xf32>
    %230 = arith.mulf %177, %229 : vector<16x128xf32>
    %231 = arith.truncf %230 : vector<16x128xf32> to vector<16x128xbf16>
    %232 = arith.truncf %217 : vector<16x32xf32> to vector<16x32xbf16>
    %233 = tpu.concatenate %231, %232 in 1 : vector<16x128xbf16>, vector<16x32xbf16> -> vector<16x160xbf16>
    %c1_74 = arith.constant 1 : index
    %c0_75 = arith.constant 0 : index
    %c0_76 = arith.constant 0 : index
    %234 = vector.load %arg6[%c1_74, %c0_75, %c0_76] : memref<2x160x32xbf16, #tpu.memory_space<vmem>>, vector<1x160x32xbf16>
    %235 = vector.shape_cast %234 : vector<1x160x32xbf16> to vector<160x32xbf16>
    %cst_77 = arith.constant dense<0.000000e+00> : vector<16x32xf32>
    %236 = tpu.matmul %233, %235, %cst_77 {dimension_numbers = #tpu.dot_dimension_numbers<[1], [0], [0], [1], [0, 0, 1, 1], [], []>} : vector<16x160xbf16>, vector<160x32xbf16>, vector<16x32xf32> -> vector<16x32xf32>
    %237 = arith.addf %145, %236 : vector<16x32xf32>
    %238 = vector.broadcast %148 : vector<1x32xf32> to vector<16x32xf32>
    %239 = arith.addf %237, %238 : vector<16x32xf32>
    %c22 = arith.constant 22 : index
    %c0_78 = arith.constant 0 : index
    %240 = vector.load %arg2[%c22, %c0_78] : memref<24x32xf32, #tpu.memory_space<vmem>>, vector<1x32xf32>
    %c23 = arith.constant 23 : index
    %c0_79 = arith.constant 0 : index
    %241 = vector.load %arg2[%c23, %c0_79] : memref<24x32xf32, #tpu.memory_space<vmem>>, vector<1x32xf32>
    %cst_80 = arith.constant dense<0.000000e+00> : vector<16xf32>
    %242 = vector.multi_reduction <add>, %239, %cst_80 [1] : vector<16x32xf32> to vector<16xf32>
    %243 = vector.shape_cast %242 : vector<16xf32> to vector<16x1xf32>
    %cst_81 = arith.constant 3.200000e+01 : f32
    %244 = vector.broadcast %cst_81 : f32 to vector<16x1xf32>
    %245 = arith.divf %243, %244 : vector<16x1xf32>
    %246 = vector.broadcast %245 : vector<16x1xf32> to vector<16x32xf32>
    %247 = arith.subf %239, %246 : vector<16x32xf32>
    %248 = arith.mulf %247, %247 : vector<16x32xf32>
    %cst_82 = arith.constant dense<0.000000e+00> : vector<16xf32>
    %249 = vector.multi_reduction <add>, %248, %cst_82 [1] : vector<16x32xf32> to vector<16xf32>
    %250 = vector.shape_cast %249 : vector<16xf32> to vector<16x1xf32>
    %cst_83 = arith.constant 3.200000e+01 : f32
    %251 = vector.broadcast %cst_83 : f32 to vector<16x1xf32>
    %252 = arith.divf %250, %251 : vector<16x1xf32>
    %253 = vector.broadcast %245 : vector<16x1xf32> to vector<16x32xf32>
    %254 = arith.subf %239, %253 : vector<16x32xf32>
    %cst_84 = arith.constant 9.99999974E-6 : f32
    %255 = vector.broadcast %cst_84 : f32 to vector<16x1xf32>
    %256 = arith.addf %252, %255 : vector<16x1xf32>
    %257 = math.rsqrt %256 : vector<16x1xf32>
    %258 = vector.broadcast %257 : vector<16x1xf32> to vector<16x32xf32>
    %259 = arith.mulf %254, %258 : vector<16x32xf32>
    %260 = vector.broadcast %240 : vector<1x32xf32> to vector<16x32xf32>
    %261 = arith.mulf %259, %260 : vector<16x32xf32>
    %262 = vector.broadcast %241 : vector<1x32xf32> to vector<16x32xf32>
    %263 = arith.addf %261, %262 : vector<16x32xf32>
    %264 = arith.truncf %263 : vector<16x32xf32> to vector<16x32xbf16>
    %c0_85 = arith.constant 0 : index
    %c0_86 = arith.constant 0 : index
    %265 = vector.load %arg7[%c0_85, %c0_86] : memref<32x128xbf16, #tpu.memory_space<vmem>>, vector<32x128xbf16>
    %cst_87 = arith.constant dense<0.000000e+00> : vector<16x128xf32>
    %266 = tpu.matmul %264, %265, %cst_87 {dimension_numbers = #tpu.dot_dimension_numbers<[1], [0], [0], [1], [0, 0, 1, 1], [], []>} : vector<16x32xbf16>, vector<32x128xbf16>, vector<16x128xf32> -> vector<16x128xf32>
    %c0_88 = arith.constant 0 : index
    %c0_89 = arith.constant 0 : index
    %267 = vector.load %arg8[%c0_88, %c0_89] : memref<16x128xf32, #tpu.memory_space<vmem>>, vector<16x128xf32>
    tpu.vector_store %arg8[%c0_88, %c0_89], %266 {strides = array<i32>} : memref<16x128xf32, #tpu.memory_space<vmem>>, vector<16x128xf32>,
    return
  }
}

</mosaic_0001>

<bundles_post_ra>
// kernel: gptj_forward.1
= control target key start
LH: loop header
LB: loop body
LE: loop exit
PB: predicated region body
PF: predicated region fallthrough
CT: control target
= control target key end

     0   :  { %s2694_s0 = inlined_call_operand.vmem [shape: s32[16], index: 0, kind: input, shape index: {}]   ;;  %s2695_s1 = inlined_call_operand.vmem [shape: f32[128,32], index: 1, kind: input, shape index: {}]   ;;  %s2696_s2 = inlined_call_operand.vmem [shape: f32[24,32], index: 2, kind: input, shape index: {}]   ;;  %s2697_s3 = inlined_call_operand.vmem [shape: f32[2,128], index: 3, kind: input, shape index: {}]   ;;  %s2698_s4 = inlined_call_operand.vmem [shape: f32[64,64], index: 4, kind: input, shape index: {}]   ;;  %s2699_s5 = inlined_call_operand.vmem [shape: bf16[2,32,224], index: 5, kind: input, shape index: {}]   ;;  %s2700_s6 = inlined_call_operand.vmem [shape: bf16[2,160,32], index: 6, kind: input, shape index: {}]   ;;  %s2701_s7 = inlined_call_operand.vmem [shape: bf16[32,128], index: 7, kind: input, shape index: {}]   ;;  %s2702_s8 = inlined_call_operand.hbm [shape: f32[16,128], index: 8, kind: output, shape index: {}]  }
   0x1   :  { %2706 = sst [smem:[#allocation8_spill]] %s2700_s6 }
   0x2   :  { %2707 = sst [smem:[#allocation9_spill]] %s2701_s7 }
   0x3   :  { %2708 = sst [smem:[#allocation10_spill]] %s2702_s8 }
   0x4   :  { %13 = vsyncpa [#allocation4], 0 }
   0x5   :  { %14 = vsyncpa [#allocation3], 0  ;;  %s21_s29 = sshll.u32 %s2694_s0, 4  ;;  %s22_s29 = int_to_ptr.vmem [resolvable:$true] %s21_s29 }
   0x6   :  { %s2068_s30 = scalar_lea.vmem %s22_s29, 16  ;;  %p2073_p1 = scmp.lt.s32.totalorder %s22_s29, %s22_s29 }
   0x7   :  { %p2069_p0 = scmp.ne.s32.totalorder %s22_s29, %s2068_s30  ;;  %p2074_p2 = scmp.lt.s32.totalorder %s2068_s30, %s2068_s30 }
   0x9   :  { %p2075_p3 = por %p2074_p2, %p2073_p1 }
   0xb   :  { %p2076_p4 = pnand %p2075_p3, %p2069_p0 }
   0xd   :  { %2079 = shalt.err (!%p2076_p4)
}
   0xe   :  { %s2106_s9 = smov [#allocation2]  }
   0xf   :  { %24 = dma.vmem_to_smem %s22_s29, 16, %s2106_s9, [#allocation4]  }
  0x10   :  { %2102 = dma.done.wait [#allocation4], 16  }
  0x11   :  { %2103 = vsyncadd [#allocation4], 4294967280 }
  0x12   :  { %42 = sfence }
  0x13   :  { %s44_s10 = sld [smem:[#allocation2]]  ;;  %s1615_s11 = sld [smem:[#allocation2 + $0x1]]  ;;  %vm134_vm0 = vcmask 1040384   ;;  %vm136_vm1 = vcmask 1041408   ;;  %vm138_vm2 = vcmask 1042432   ;;  %vm140_vm3 = vcmask 1043456  }
  0x14   :  { %s1616_s12 = sld [smem:[#allocation2 + $0x2]]  ;;  %s1617_s13 = sld [smem:[#allocation2 + $0x3]]  ;;  %vm142_vm4 = vcmask 1044480   ;;  %vm144_vm5 = vcmask 1045504   ;;  %vm146_vm6 = vcmask 1046528   ;;  %v155_v20 = vld [vmem:[%s2696_s2] sm:$0xff] }
  0x15   :  { %s1618_s14 = sld [smem:[#allocation2 + $0x4]]  ;;  %s1619_s15 = sld [smem:[#allocation2 + $0x5]]  ;;  %vm171_vm7 = vcmask 261120   ;;  %v156_v44 = vld [vmem:[%s2696_s2 + $0x8] sm:$0xff]  ;;  %v2107_v62 = vmov 0.0   ;;  %vm2108_vm8 = vmmov 0  }
  0x16   :  { %s1620_s0 = sld [smem:[#allocation2 + $0x6]]  ;;  %s1621_s16 = sld [smem:[#allocation2 + $0x7]]  ;;  %v1954_v60 = vld [vmem:[%s2699_s5] ss:$8 sps:$4 sm:$0xff]   ;;  %v1955_v61 = vld [vmem:[%s2699_s5 + $0x4] ss:$8 sps:$4 sm:$0xff]   ;;  %1768 = vmatprep.subr.bf16.mxu0 %v2107_v62  ;;  %1776 = vmatprep.subr.bf16.mxu1 %v2107_v62 }
  0x17   :  { %s2168_s17 = sld [smem:[#allocation2 + $0x8]]  ;;  %s2170_s18 = sld [smem:[#allocation2 + $0x9]]  ;;  %1769 = vmatpush3.bf16.msra.mxu0 %v1954_v60  ;;  %1777 = vmatpush3.bf16.msra.mxu1 %v1955_v61  ;;  %v1956_v63 = vld [vmem:[%s2699_s5 + $0x10] ss:$8 sps:$4 sm:$0xff]   ;;  %vm369_vm9 = vcmask 64512   ;;  %vm459_vm10 = vcmask 523264  }
  0x18   :  { %s2172_s19 = sld [smem:[#allocation2 + $0xa]]  ;;  %s2174_s20 = sld [smem:[#allocation2 + $0xb]]  ;;  %1770 = vmatprep.subr.bf16.mxu0 %v2107_v62  ;;  %1778 = vmatprep.subr.bf16.mxu1 %v2107_v62  ;;  %vm667_vm11 = vcmask 130048   ;;  %vm670_vm12 = vcmask 195584  }
  0x19   :  { %s45_s23 = scalar_lea.vmem %s2695_s1, %s44_s10  ;;  %s48_s26 = scalar_lea.vmem %s2695_s1, %s1615_s11  ;;  %1772 = vmatprep.mubr.msk.bf16.mxu0 %vm2108_vm8, %v2107_v62  ;;  %1780 = vmatprep.mubr.msk.bf16.mxu1 %vm2108_vm8, %v2107_v62 }
  0x1a   :  { %v46_v0 = vld [vmem:[%s45_s23] sm:$0x1]  ;;  %s51_s29 = scalar_lea.vmem %s2695_s1, %s1616_s12  ;;  %s54_s8 = scalar_lea.vmem %s2695_s1, %s1617_s13 }
  0x1b   :  { %v49_v1 = vld [vmem:[%s48_s26] sm:$0x1]  ;;  %s57_s10 = scalar_lea.vmem %s2695_s1, %s1618_s14  ;;  %s60_s11 = scalar_lea.vmem %s2695_s1, %s1619_s15  ;;  %1771 = vmatpush3.bf16.msra.mxu0 %v1956_v63 }
  0x1c   :  { %v52_v2 = vld [vmem:[%s51_s29] sm:$0x1]  ;;  %v93_v4 = vrot.slane %v49_v1, 7  ;;  %s63_s13 = scalar_lea.vmem %s2695_s1, %s1620_s0  ;;  %s66_s6 = scalar_lea.vmem %s2695_s1, %s1621_s16 }
  0x1d   :  { %v55_v3 = vld [vmem:[%s54_s8] sm:$0x1]  ;;  %v96_v7 = vrot.slane %v52_v2, 6  ;;  %s69_s15 = scalar_lea.vmem %s2695_s1, %s2168_s17  ;;  %s72_s26 = scalar_lea.vmem %s2695_s1, %s2170_s18 }
  0x1e   :  { %v58_v5 = vld [vmem:[%s57_s10] sm:$0x1]  ;;  %v99_v8 = vrot.slane %v55_v3, 5  ;;  %v135_v13 = vsel %vm134_vm0, %v46_v0, %v93_v4  ;;  %s75_s28 = scalar_lea.vmem %s2695_s1, %s2172_s19  ;;  %s78_s9 = scalar_lea.vmem %s2695_s1, %s2174_s20  ;;  %v1957_v0 = vld [vmem:[%s2699_s5 + $0x14] ss:$8 sps:$4 sm:$0xff]  }
  0x1f   :  { %v61_v6 = vld [vmem:[%s60_s11] sm:$0x1]  ;;  %v102_v11 = vrot.slane %v58_v5, 4  ;;  %v137_v16 = vsel %vm136_vm1, %v135_v13, %v96_v7  ;;  %s1626_s18 = sld [smem:[#allocation2 + $0xc]]  ;;  %s1627_s21 = sld [smem:[#allocation2 + $0xd]]  ;;  %1779 = vmatpush3.bf16.msra.mxu1 %v1957_v0 }
  0x20   :  { %v64_v9 = vld [vmem:[%s63_s13] sm:$0x1]  ;;  %v105_v12 = vrot.slane %v61_v6, 3  ;;  %v139_v19 = vsel %vm138_vm2, %v137_v16, %v99_v8  ;;  %s1628_s22 = sld [smem:[#allocation2 + $0xe]]  ;;  %s1629_s19 = sld [smem:[#allocation2 + $0xf]] }
  0x21   :  { %v67_v10 = vld [vmem:[%s66_s6] sm:$0x1]  ;;  %v108_v14 = vrot.slane %v64_v9, 2  ;;  %v141_v23 = vsel %vm140_vm3, %v139_v19, %v102_v11  ;;  %v1630_v9 = vld [vmem:[%s2696_s2 + $0x10] ss:$0 sm:$0xff]  ;;  %s2109_s11 = smov 112  }
  0x22   :  { %v111_v15 = vrot.slane %v67_v10, 1  ;;  %v70_v17 = vld [vmem:[%s69_s15] sm:$0x1]  ;;  %v143_v26 = vsel %vm142_vm4, %v141_v23, %v105_v12  ;;  %v1631_v13 = vld [vmem:[%s2696_s2 + $0x11] ss:$0 sm:$0xff]  ;;  %s2111_s23 = smov 104  }
  0x23   :  { %v73_v18 = vld [vmem:[%s72_s26] sm:$0x1]  ;;  %v145_v28 = vsel %vm144_vm5, %v143_v26, %v108_v14  ;;  %s2112_s13 = smov 96   ;;  %s2113_s17 = smov 64  }
  0x24   :  { %v76_v21 = vld [vmem:[%s75_s28] sm:$0x1]  ;;  %v114_v24 = vrot.slane %v73_v18, 7  ;;  %v147_v30 = vsel %vm146_vm6, %v145_v28, %v111_v15  ;;  %s2115_s30 = smov 8  }
  0x25   :  { %v79_v22 = vld [vmem:[%s78_s9] sm:$0x1]  ;;  %v117_v25 = vrot.slane %v76_v21, 6  ;;  %v2228_v32 = vadd.f32 %v155_v20, %v147_v30  ;;  %s81_s12 = scalar_lea.vmem %s2695_s1, %s1626_s18  ;;  %s84_s24 = scalar_lea.vmem %s2695_s1, %s1627_s21 }
  0x26   :  { %v120_v27 = vrot.slane %v79_v22, 5  ;;  %v148_v29 = vsel %vm134_vm0, %v70_v17, %v114_v24  ;;  %v82_v34 = vld [vmem:[%s81_s12] sm:$0x1]  ;;  %s87_s7 = scalar_lea.vmem %s2695_s1, %s1628_s22  ;;  %s90_s25 = scalar_lea.vmem %s2695_s1, %s1629_s19 }
  0x27   :  { %v149_v31 = vsel %vm136_vm1, %v148_v29, %v117_v25  ;;  %v172_v33 = vsel %vm171_vm7, %v2228_v32, 0.0  ;;  %v85_v36 = vld [vmem:[%s84_s24] sm:$0x1]  ;;  %v123_v38 = vrot.slane %v82_v34, 4  ;;  %s2110_s12 = smov 120   ;;  %s2709_s18 = sld [smem:[#allocation8_spill]] }
  0x28   :  { %v150_v35 = vsel %vm138_vm2, %v149_v31, %v120_v27  ;;  %173 = vadd.xlane.f32.xlu0 %v172_v33  ;;  %v88_v37 = vld [vmem:[%s87_s7] sm:$0x1]  ;;  %v126_v40 = vrot.slane %v85_v36, 3  ;;  %s2116_s9 = smov 24  }
  0x29   :  { %v91_v39 = vld [vmem:[%s90_s25] sm:$0x1]  ;;  %v129_v41 = vrot.slane %v88_v37, 2  ;;  %v151_v43 = vsel %vm140_vm3, %v150_v35, %v123_v38  ;;  %s2710_s25 = sld [smem:[#allocation9_spill]] }
  0x2a   :  { %v132_v42 = vrot.slane %v91_v39, 1  ;;  %v152_v45 = vsel %vm142_vm4, %v151_v43, %v126_v40  ;;  %v1632_v18 = vld [vmem:[%s2697_s3] ss:$0 sm:$0xff] }
  0x2b   :  { %v153_v46 = vsel %vm144_vm5, %v152_v45, %v129_v41 }
  0x2c   :  { %v154_v47 = vsel %vm146_vm6, %v153_v46, %v132_v42 }
  0x2d   :  { %v2252_v48 = vadd.f32 %v156_v44, %v154_v47 }
  0x2f   :  { %v175_v49 = vsel %vm171_vm7, %v2252_v48, 0.0 }
  0x30   :  { %176 = vadd.xlane.f32.xlu0 %v175_v49 }
  0xb5   :  { %v174_v50 = vpop.xlane.xlu0 %173 }
  0xb6   :  { %v179_v51 = vmul.f32 0.03125, %v174_v50 }
  0xb8   :  { %v181_v52 = vsub.f32 %v2228_v32, %v179_v51 }
  0xba   :  { %v183_v53 = vmul.f32 %v181_v52, %v181_v52 }
  0xbc   :  { %v185_v54 = vsel %vm171_vm7, %v183_v53, 0.0 }
  0xbd   :  { %186 = vadd.xlane.f32.xlu1 %v185_v54  ;;  %v177_v55 = vpop.xlane.xlu0 %176 }
  0xbe   :  { %v180_v56 = vmul.f32 0.03125, %v177_v55 }
  0xc0   :  { %v182_v57 = vsub.f32 %v2252_v48, %v180_v56 }
  0xc2   :  { %v184_v58 = vmul.f32 %v182_v57, %v182_v57 }
  0xc4   :  { %v188_v59 = vsel %vm171_vm7, %v184_v58, 0.0 }
  0xc5   :  { %189 = vadd.xlane.f32.xlu1 %v188_v59 }
 0x14a   :  { %v187_v1 = vpop.xlane.xlu1 %186 }
 0x14b   :  { %v191_v2 = vmul.f32 0.03125, %v187_v1 }
 0x14d   :  { %v193_v3 = vadd.f32 1e-05, %v191_v2 }
 0x14f   :  { %1984 = vrsqrt.f32 %v193_v3 }
 0x152   :  { %v190_v4 = vpop.xlane.xlu1 %189 }
 0x153   :  { %v192_v5 = vmul.f32 0.03125, %v190_v4 }
 0x155   :  { %v194_v6 = vadd.f32 1e-05, %v192_v5 }
 0x157   :  { %1986 = vrsqrt.f32 %v194_v6 }
 0x159   :  { %v1985_v7 = vpop.eup %1984 }
 0x15a   :  { %v197_v8 = vmul.f32 %v1985_v7, %v181_v52 }
 0x15c   :  { %v203_v12 = vmul.f32 %v1630_v9, %v197_v8 }
 0x15e   :  { %v209_v15 = vadd.f32 %v1631_v13, %v203_v12 }
 0x161   :  { %v1987_v10 = vpop.eup %1986 }
 0x162   :  { %v198_v11 = vmul.f32 %v1987_v10, %v182_v57  ;;  %v2343_v10 = vld [vmem:[%s2698_s4] sm:$0xff] }
 0x164   :  { %v204_v14 = vmul.f32 %v1630_v9, %v198_v11  ;;  %v2338_v9 = vld [vmem:[%s2698_s4 + $0x10] sm:$0xff] }
 0x166   :  { %v210_v16 = vadd.f32 %v1631_v13, %v204_v14  ;;  %v2349_v14 = vld [vmem:[%s2698_s4 + $0x8] sm:$0xff] }
 0x168   :  { %v211_v17 = vpack.c.bf16 %v210_v16, %v209_v15 }
 0x16a   :  { %1773 = vmatmul.mubr.msk.bf16.vlgmr.msra.gmra.mrb[0].mxu0 %vm171_vm7, %v211_v17  ;;  %1781 = vmatmul.mubr.msk.bf16.vlgmr.msra.gmra.mrb[0].mxu1 %vm171_vm7, %v211_v17 }
 0x23d   :  { %v269_v19 = vpop.f32.mrb[0].mxu0  ;;  %v326_v20 = vpop.f32.mrb[0].mxu1 }
 0x23e   :  { %v270_v21 = vadd.f32 %v1632_v18, %v269_v19  ;;  %v1774_v22 = vpop.f32.mrb[1].mxu0  ;;  %v1782_v23 = vpop.f32.mrb[1].mxu1  ;;  %v2356_v19 = vld [vmem:[%s2698_s4 + $0x18] sm:$0xff] }
 0x23f   :  { %v272_v24 = vpop.f32.mrb[2].mxu0  ;;  %v329_v25 = vpop.f32.mrb[2].mxu1 }
 0x240   :  { %v673_v26 = vmul.f32 %v270_v21, %v270_v21  ;;  %v273_v27 = vadd.f32 %v1632_v18, %v272_v24  ;;  %v2291_v28 = vpack.c.bf16 %v329_v25, %v326_v20  ;;  %v1775_v29 = vpop.f32.mrb[3].mxu0  ;;  %v1783_v30 = vpop.f32.mrb[3].mxu1  ;;  %v1899_v31 = vpack.i.bf16 %v329_v25, %v326_v20  ;;  %v2365_v24 = vld [vmem:[%s2698_s4 + $0x20] sm:$0xff] }
 0x241   :  { %v2375_v29 = vld [vmem:[%s2698_s4 + $0x28] sm:$0xff] }
 0x242   :  { %v675_v33 = vmul.f32 %v673_v26, %v270_v21  ;;  %v674_v34 = vmul.f32 %v273_v27, %v273_v27  ;;  %1900 = vrot.lane.b32.xlu1 %v1899_v31, %s2109_s11  ;;  %1792 = vmatprep.mubr.msk.bf16.mxu0 %vm369_vm9, %v2291_v28  ;;  %v2370_v26 = vld [vmem:[%s2698_s4 + $0x30] sm:$0xff] }
 0x243   :  { %1895 = vrot.lane.b32.xlu0 %v1899_v31, %s2110_s12 }
 0x244   :  { %v677_v35 = vmul.f32 0.044715, %v675_v33  ;;  %v676_v36 = vmul.f32 %v674_v34, %v273_v27 }
 0x246   :  { %v679_v37 = vadd.f32 %v677_v35, %v270_v21  ;;  %v678_v38 = vmul.f32 0.044715, %v676_v36  ;;  %1905 = vrot.lane.b32.xlu1 %v1899_v31, %s2111_s23  ;;  %v2383_v36 = vld [vmem:[%s2698_s4 + $0x38] sm:$0xff]  ;;  %s2117_s4 = smov 16  }
 0x248   :  { %v681_v39 = vmul.f32 0.7978846, %v679_v37  ;;  %v680_v40 = vadd.f32 %v678_v38, %v273_v27 }
 0x24a   :  { %1988 = vtanh.f32 %v681_v39  ;;  %v682_v41 = vmul.f32 0.7978846, %v680_v40  ;;  %361 = vrot.lane.b32.xlu1 %v2291_v28, %s2112_s13 }
 0x24c   :  { %1990 = vtanh.f32 %v682_v41 }
 0x254   :  { %v1989_v42 = vpop.eup %1988 }
 0x255   :  { %v685_v43 = vadd.f32 1.0, %v1989_v42 }
 0x256   :  { %v1991_v44 = vpop.eup %1990 }
 0x257   :  { %v687_v45 = vmul.f32 0.5, %v685_v43  ;;  %v686_v46 = vadd.f32 1.0, %v1991_v44 }
 0x259   :  { %v688_v47 = vmul.f32 0.5, %v686_v46  ;;  %v2300_v49 = vmul.f32 %v687_v45, %v270_v21 }
 0x25b   :  { %v2302_v50 = vmul.f32 %v688_v47, %v273_v27 }
 0x25d   :  { %v691_v51 = vpack.c.bf16 %v2302_v50, %v2300_v49 }
 0x2b4   :  { %v1901_v52 = vpop.permute.xlu1 %1900 }
 0x2b5   :  { %v1903_v53 = vunpack.i.h.bf16 %v1901_v52  ;;  %v1902_v54 = vunpack.i.l.bf16 %v1901_v52  ;;  %v1896_v55 = vpop.permute.xlu0 %1895 }
 0x2b6   :  { %v1898_v56 = vunpack.i.h.bf16 %v1896_v55  ;;  %v1897_v57 = vunpack.i.l.bf16 %v1896_v55 }
 0x2b7   :  { %v2306_v58 = vpack.c.bf16 %v1903_v53, %v1902_v54 }
 0x2b8   :  { %v2308_v59 = vpack.c.bf16 %v1898_v56, %v1897_v57  ;;  %v1906_v60 = vpop.permute.xlu1 %1905 }
 0x2b9   :  { %v1908_v61 = vunpack.i.h.bf16 %v1906_v60  ;;  %v1907_v63 = vunpack.i.l.bf16 %v1906_v60  ;;  %365 = vrot.lane.b32.xlu1 %v2306_v58, %s2112_s13 }
 0x2ba   :  { %363 = vrot.lane.b32.xlu0 %v2308_v59, %s2112_s13 }
 0x2bb   :  { %v2314_v0 = vpack.c.bf16 %v1908_v61, %v1907_v63 }
 0x2bc   :  { %v362_v1 = vpop.permute.xlu1 %361 }
 0x2bd   :  { %v383_v2 = vsel %vm369_vm9, %v362_v1, 0  ;;  %1872 = vmatprep.subr.msk.bf16.mxu0 %vm369_vm9, %v362_v1 }
 0x2be   :  { %367 = vrot.lane.b32.xlu0 %v2314_v0, %s2112_s13  ;;  %1785 = vmatpush3.bf16.xpose.msra.mxu0 %v383_v2 }
 0x32b   :  { %v366_v5 = vpop.permute.xlu1 %365 }
 0x32c   :  { %v364_v3 = vpop.permute.xlu0 %363  ;;  %v389_v6 = vsel %vm369_vm9, %v366_v5, 0 }
 0x32d   :  { %v386_v4 = vsel %vm369_vm9, %v364_v3, 0  ;;  %1873 = vmatprep.subr.msk.bf16.mxu0 %vm369_vm9, %v364_v3 }
 0x32e   :  { %1787 = vmatpush3.bf16.xpose.msra.mxu0 %v386_v4 }
 0x32f   :  { %1874 = vmatprep.subr.msk.bf16.mxu0 %vm369_vm9, %v366_v5 }
 0x330   :  { %v368_v7 = vpop.permute.xlu0 %367 }
 0x331   :  { %v392_v8 = vsel %vm369_vm9, %v368_v7, 0 }
 0x336   :  { %1789 = vmatpush3.bf16.xpose.msra.mxu0 %v389_v6 }
 0x337   :  { %1875 = vmatprep.subr.msk.bf16.mxu0 %vm369_vm9, %v368_v7 }
 0x33e   :  { %1791 = vmatpush3.bf16.xpose.msra.mxu0 %v392_v8 }
 0x33f   :  { %1816 = vmatprep.subr.bf16.mxu0 %v2107_v62 }
 0x345   :  { %1793 = vmatmul.mubr.msk.bf16.vlgmr.msra.gmra.mrb[4].mxu0 %vm369_vm9, %v2308_v59 }
 0x346   :  { %1796 = vmatprep.mubr.msk.bf16.mxu0 %vm369_vm9, %v2306_v58 }
 0x34d   :  { %1797 = vmatmul.mubr.msk.bf16.gmra.mrb[8].mxu0 %vm369_vm9, %v2314_v0 }
 0x34e   :  { %1820 = vmatprep.mubr.msk.bf16.mxu0 %vm2108_vm8, %v2107_v62 }
 0x418   :  { %v1794_v11 = vpop.f32.mrb[4].mxu0 }
 0x419   :  { %v437_v12 = vadd.f32 %v1794_v11, %v2338_v9  ;;  %v428_v13 = vpop.f32.mrb[5].mxu0 }
 0x41a   :  { %v429_v15 = vadd.f32 %v428_v13, %v2343_v10  ;;  %v1795_v16 = vpop.f32.mrb[6].mxu0 }
 0x41b   :  { %v431_v17 = vpop.f32.mrb[7].mxu0  ;;  %v466_v18 = vsel %vm459_vm10, %v437_v12, -inf  ;;  %v440_v23 = vadd.f32 %v1795_v16, %v2356_v19 }
 0x41c   :  { %v432_v20 = vadd.f32 %v431_v17, %v2349_v14  ;;  %467 = vmax.xlane.f32.xlu0 %v466_v18  ;;  %v460_v21 = vsel %vm459_vm10, %v429_v15, -inf }
 0x41d   :  { %461 = vmax.xlane.f32.xlu1 %v460_v21  ;;  %v469_v34 = vsel %vm459_vm10, %v440_v23, -inf }
 0x41e   :  { %v463_v22 = vsel %vm459_vm10, %v432_v20, -inf }
 0x420   :  { %v1798_v25 = vpop.f32.mrb[8].mxu0  ;;  %464 = vmax.xlane.f32.xlu0 %v463_v22 }
 0x421   :  { %v444_v27 = vpop.f32.mrb[9].mxu0  ;;  %v453_v35 = vadd.f32 %v1798_v25, %v2370_v26 }
 0x422   :  { %v445_v30 = vadd.f32 %v444_v27, %v2365_v24  ;;  %v1799_v31 = vpop.f32.mrb[10].mxu0 }
 0x423   :  { %v447_v33 = vpop.f32.mrb[11].mxu0  ;;  %v456_v40 = vadd.f32 %v1799_v31, %v2383_v36  ;;  %v478_v41 = vsel %vm459_vm10, %v453_v35, -inf }
 0x424   :  { %v448_v37 = vadd.f32 %v447_v33, %v2375_v29  ;;  %470 = vmax.xlane.f32.xlu0 %v469_v34  ;;  %v472_v38 = vsel %vm459_vm10, %v445_v30, -inf }
 0x425   :  { %473 = vmax.xlane.f32.xlu1 %v472_v38  ;;  %v481_v42 = vsel %vm459_vm10, %v456_v40, -inf }
 0x426   :  { %v475_v39 = vsel %vm459_vm10, %v448_v37, -inf }
 0x428   :  { %476 = vmax.xlane.f32.xlu0 %v475_v39 }
 0x429   :  { %479 = vmax.xlane.f32.xlu1 %v478_v41 }
 0x42c   :  { %482 = vmax.xlane.f32.xlu0 %v481_v42 }
 0x43a   :  { %552 = vrot.lane.b32.xlu1 %v2291_v28, %s2113_s17 }
 0x4a9   :  { %v468_v43 = vpop.xlane.xlu0 %467 }
 0x4aa   :  { %v486_v44 = vsub.f32 %v437_v12, %v468_v43  ;;  %v462_v45 = vpop.xlane.xlu1 %461 }
 0x4ab   :  { %v484_v46 = vsub.f32 %v429_v15, %v462_v45 }
 0x4ac   :  { %v496_v47 = vmul.f32 1.442695, %v486_v44 }
 0x4ad   :  { %v492_v52 = vmul.f32 1.442695, %v484_v46  ;;  %v465_v53 = vpop.xlane.xlu0 %464 }
 0x4ae   :  { %1992 = vpow2.f32 %v496_v47  ;;  %v485_v54 = vsub.f32 %v432_v20, %v465_v53 }
 0x4af   :  { %1994 = vpow2.f32 %v492_v52 }
 0x4b0   :  { %v494_v60 = vmul.f32 1.442695, %v485_v54 }
 0x4b1   :  { %v471_v55 = vpop.xlane.xlu0 %470 }
 0x4b2   :  { %v487_v56 = vsub.f32 %v440_v23, %v471_v55  ;;  %v474_v57 = vpop.xlane.xlu1 %473 }
 0x4b3   :  { %v488_v63 = vsub.f32 %v445_v30, %v474_v57 }
 0x4b4   :  { %v498_v61 = vmul.f32 1.442695, %v487_v56 }
 0x4b5   :  { %v477_v1 = vpop.xlane.xlu0 %476  ;;  %v500_v5 = vmul.f32 1.442695, %v488_v63 }
 0x4b6   :  { %1996 = vpow2.f32 %v498_v61  ;;  %v480_v2 = vpop.xlane.xlu1 %479  ;;  %v489_v4 = vsub.f32 %v448_v37, %v477_v1 }
 0x4b7   :  { %v490_v28 = vsub.f32 %v453_v35, %v480_v2  ;;  %1998 = vpow2.f32 %v494_v60 }
 0x4b8   :  { %v2393_v3 = vpop.eup %1992  ;;  %v502_v15 = vmul.f32 1.442695, %v489_v4 }
 0x4b9   :  { %v504_v6 = vmul.f32 1.442695, %v490_v28  ;;  %v483_v7 = vpop.xlane.xlu0 %482  ;;  %v514_v8 = vsel %vm459_vm10, %v2393_v3, 0.0  ;;  %v1995_v11 = vpop.eup %1994 }
 0x4ba   :  { %v491_v12 = vsub.f32 %v456_v40, %v483_v7  ;;  %515 = vadd.xlane.f32.xlu1 %v514_v8  ;;  %v553_v13 = vpop.permute.xlu1 %552  ;;  %v508_v17 = vsel %vm459_vm10, %v1995_v11, 0.0 }
 0x4bb   :  { %2000 = vpow2.f32 %v504_v6  ;;  %1800 = vmatprep.subr.bf16.mxu1 %v553_v13 }
 0x4bc   :  { %v506_v16 = vmul.f32 1.442695, %v491_v12  ;;  %1801 = vmatpush3.bf16.msra.mxu1 %v553_v13  ;;  %2002 = vpow2.f32 %v500_v5  ;;  %v1959_v12 = vld [vmem:[%s2709_s18 + $0x8] sm:$0xff]   ;;  %v1960_v13 = vld [vmem:[%s2709_s18 + $0x10] sm:$0xff]  }
 0x4be   :  { %2004 = vpow2.f32 %v506_v16  ;;  %509 = vadd.xlane.f32.xlu1 %v508_v17  ;;  %v1962_v16 = vld [vmem:[%s2709_s18 + $0x20] sm:$0xff]   ;;  %v1963_v17 = vld [vmem:[%s2709_s18 + $0x28] sm:$0xff]  }
 0x4bf   :  { %2006 = vpow2.f32 %v502_v15  ;;  %v1961_v15 = vld [vmem:[%s2709_s18 + $0x18] sm:$0xff]  }
 0x4c0   :  { %v1997_v18 = vpop.eup %1996 }
 0x4c1   :  { %v517_v20 = vsel %vm459_vm10, %v1997_v18, 0.0  ;;  %v1999_v21 = vpop.eup %1998 }
 0x4c2   :  { %518 = vadd.xlane.f32.xlu0 %v517_v20  ;;  %v511_v23 = vsel %vm459_vm10, %v1999_v21, 0.0  ;;  %v1965_v20 = vld [vmem:[%s2709_s18 + $0x38] sm:$0xff]  }
 0x4c5   :  { %v2399_v22 = vpop.eup %2000 }
 0x4c6   :  { %512 = vadd.xlane.f32.xlu0 %v511_v23  ;;  %v526_v25 = vsel %vm459_vm10, %v2399_v22, 0.0  ;;  %v2003_v27 = vpop.eup %2002 }
 0x4c7   :  { %527 = vadd.xlane.f32.xlu1 %v526_v25  ;;  %v520_v34 = vsel %vm459_vm10, %v2003_v27, 0.0 }
 0x4c8   :  { %v2005_v30 = vpop.eup %2004 }
 0x4c9   :  { %v529_v31 = vsel %vm459_vm10, %v2005_v30, 0.0  ;;  %v2007_v33 = vpop.eup %2006 }
 0x4ca   :  { %530 = vadd.xlane.f32.xlu0 %v529_v31  ;;  %v523_v35 = vsel %vm459_vm10, %v2007_v33, 0.0  ;;  %v1967_v31 = vld [vmem:[%s2709_s18 + $0x48] sm:$0xff]  }
 0x4cb   :  { %521 = vadd.xlane.f32.xlu1 %v520_v34 }
 0x4ce   :  { %524 = vadd.xlane.f32.xlu0 %v523_v35 }
 0x4dc   :  { %556 = vrot.lane.b32.xlu1 %v2306_v58, %s2113_s17 }
 0x4e0   :  { %558 = vrot.lane.b32.xlu1 %v2314_v0, %s2113_s17 }
 0x4e4   :  { %554 = vrot.lane.b32.xlu0 %v2308_v59, %s2113_s17 }
 0x547   :  { %v516_v37 = vpop.xlane.xlu1 %515 }
 0x54b   :  { %v510_v38 = vpop.xlane.xlu1 %509 }
 0x54c   :  { %2008 = vrcp.f32 %v510_v38 }
 0x54f   :  { %v519_v39 = vpop.xlane.xlu0 %518 }
 0x553   :  { %v513_v40 = vpop.xlane.xlu0 %512 }
 0x554   :  { %2010 = vrcp.f32 %v513_v40  ;;  %v528_v41 = vpop.xlane.xlu1 %527 }
 0x555   :  { %2012 = vrcp.f32 %v519_v39 }
 0x556   :  { %2014 = vrcp.f32 %v516_v37  ;;  %v2009_v58 = vpop.eup %2008 }
 0x557   :  { %v531_v42 = vpop.xlane.xlu0 %530  ;;  %v540_v47 = vmul.f32 %v2009_v58, %v1995_v11  ;;  %v2114_v11 = vmov 0  }
 0x558   :  { %v522_v43 = vpop.xlane.xlu1 %521 }
 0x559   :  { %2016 = vrcp.f32 %v522_v43 }
 0x55b   :  { %v525_v44 = vpop.xlane.xlu0 %524 }
 0x55c   :  { %2018 = vrcp.f32 %v525_v44  ;;  %v557_v0 = vpop.permute.xlu1 %556 }
 0x55d   :  { %2020 = vrcp.f32 %v531_v42 }
 0x55e   :  { %v2011_v45 = vpop.eup %2010  ;;  %2022 = vrcp.f32 %v528_v41 }
 0x55f   :  { %v555_v46 = vpop.permute.xlu0 %554  ;;  %v541_v59 = vmul.f32 %v2011_v45, %v1999_v21  ;;  %v2013_v53 = vpop.eup %2012  ;;  %v1966_v21 = vld [vmem:[%s2709_s18 + $0x40] sm:$0xff]  }
 0x560   :  { %1802 = vmatprep.subr.bf16.mxu1 %v555_v46  ;;  %v2015_v54 = vpop.eup %2014  ;;  %v559_v56 = vpop.permute.xlu1 %558  ;;  %v543_v60 = vmul.f32 %v2013_v53, %v1997_v18  ;;  %v1964_v18 = vld [vmem:[%s2709_s18 + $0x30] sm:$0xff]  }
 0x561   :  { %1803 = vmatpush3.bf16.msra.mxu1 %v555_v46  ;;  %v548_v52 = vpack.c.bf16 %v541_v59, %v540_v47  ;;  %v542_v63 = vmul.f32 %v2015_v54, %v2393_v3  ;;  %v1958_v3 = vld [vmem:[%s2709_s18] sm:$0xff]  }
 0x562   :  { %1804 = vmatprep.subr.bf16.mxu1 %v557_v0 }
 0x563   :  { %1808 = vmatprep.mubr.msk.bf16.mxu1 %vm459_vm10, %v548_v52  ;;  %v2017_v55 = vpop.eup %2016  ;;  %v549_v2 = vpack.c.bf16 %v543_v60, %v542_v63 }
 0x564   :  { %v544_v1 = vmul.f32 %v2017_v55, %v2003_v27 }
 0x565   :  { %1805 = vmatpush3.bf16.msra.mxu1 %v557_v0 }
 0x566   :  { %v2019_v57 = vpop.eup %2018  ;;  %1806 = vmatprep.subr.bf16.mxu1 %v559_v56 }
 0x567   :  { %v545_v61 = vmul.f32 %v2019_v57, %v2007_v33  ;;  %v2021_v28 = vpop.eup %2020  ;;  %v1658_v57 = vld [vmem:[%s2696_s2 + $0x12] ss:$0 sm:$0xff] }
 0x568   :  { %v2023_v5 = vpop.eup %2022  ;;  %v547_v6 = vmul.f32 %v2021_v28, %v2005_v30 }
 0x569   :  { %1807 = vmatpush3.bf16.msra.mxu1 %v559_v56  ;;  %v550_v4 = vpack.c.bf16 %v545_v61, %v544_v1  ;;  %v546_v7 = vmul.f32 %v2023_v5, %v2399_v22 }
 0x56a   :  { %776 = vmatprep.subr.bf16.mxu1 %v2114_v11 }
 0x56b   :  { %v551_v8 = vpack.c.bf16 %v547_v6, %v546_v7 }
 0x56c   :  { %1809 = vmatmul.mubr.msk.bf16.vlgmr.msra.gmra.mrb[4].mxu1 %vm459_vm10, %v549_v2 }
 0x56d   :  { %1812 = vmatprep.mubr.msk.bf16.mxu1 %vm459_vm10, %v550_v4  ;;  %777 = vmatpush1.bf16.msra.mxu1 %v1958_v3 }
 0x56e   :  { %778 = vmatprep.subr.bf16.mxu1 %v2114_v11 }
 0x571   :  { %779 = vmatpush1.bf16.msra.mxu1 %v1959_v12 }
 0x572   :  { %780 = vmatprep.subr.bf16.mxu1 %v2114_v11 }
 0x574   :  { %1813 = vmatmul.mubr.msk.bf16.gmra.mrb[8].mxu1 %vm459_vm10, %v551_v8 }
 0x575   :  { %781 = vmatpush1.bf16.msra.mxu1 %v1960_v13 }
 0x576   :  { %782 = vmatprep.subr.bf16.mxu1 %v2114_v11 }
 0x579   :  { %783 = vmatpush1.bf16.msra.mxu1 %v1961_v15 }
 0x57a   :  { %784 = vmatprep.subr.bf16.mxu1 %v2114_v11 }
 0x57d   :  { %785 = vmatpush1.bf16.msra.mxu1 %v1962_v16  ;;  %v1968_v16 = vld [vmem:[%s2699_s5 + $0x20] ss:$8 sps:$4 sm:$0xff]  }
 0x57e   :  { %786 = vmatprep.subr.bf16.mxu1 %v2114_v11  ;;  %1817 = vmatpush3.bf16.msra.mxu0 %v1968_v16 }
 0x57f   :  { %1818 = vmatprep.subr.bf16.mxu0 %v2107_v62 }
 0x581   :  { %787 = vmatpush1.bf16.msra.mxu1 %v1963_v17  ;;  %v1969_v17 = vld [vmem:[%s2699_s5 + $0x30] ss:$8 sps:$4 sm:$0xff]  }
 0x582   :  { %788 = vmatprep.subr.bf16.mxu1 %v2114_v11  ;;  %1819 = vmatpush3.bf16.msra.mxu0 %v1969_v17 }
 0x583   :  { %1824 = vmatprep.subr.bf16.mxu0 %v2107_v62 }
 0x585   :  { %789 = vmatpush1.bf16.msra.mxu1 %v1964_v18 }
 0x586   :  { %790 = vmatprep.subr.bf16.mxu1 %v2114_v11 }
 0x589   :  { %791 = vmatpush1.bf16.msra.mxu1 %v1965_v20 }
 0x58a   :  { %792 = vmatprep.subr.bf16.mxu1 %v2114_v11 }
 0x58d   :  { %793 = vmatpush1.bf16.msra.mxu1 %v1966_v21 }
 0x58e   :  { %794 = vmatprep.subr.bf16.mxu1 %v2114_v11 }
 0x591   :  { %795 = vmatpush1.bf16.msra.mxu1 %v1967_v31  ;;  %v1659_v31 = vld [vmem:[%s2696_s2 + $0x13] ss:$0 sm:$0xff] }
 0x63f   :  { %v1810_v22 = vpop.f32.mrb[4].mxu1 }
 0x640   :  { %v610_v23 = vpop.f32.mrb[5].mxu1 }
 0x641   :  { %v1811_v25 = vpop.f32.mrb[6].mxu1 }
 0x642   :  { %v1909_v27 = vpack.i.bf16 %v1811_v25, %v1810_v22  ;;  %v613_v30 = vpop.f32.mrb[7].mxu1 }
 0x644   :  { %1910 = vrot.lane.b32.xlu1 %v1909_v27, %s2115_s30 }
 0x647   :  { %v1814_v33 = vpop.f32.mrb[8].mxu1 }
 0x648   :  { %v626_v34 = vpop.f32.mrb[9].mxu1 }
 0x649   :  { %v1815_v35 = vpop.f32.mrb[10].mxu1 }
 0x64a   :  { %v1919_v37 = vpack.i.bf16 %v1815_v35, %v1814_v33  ;;  %v629_v38 = vpop.f32.mrb[11].mxu1 }
 0x64b   :  { %v1914_v39 = vpack.i.bf16 %v629_v38, %v626_v34 }
 0x64c   :  { %1920 = vrot.lane.b32.xlu1 %v1919_v37, %s2116_s9  ;;  %v1660_v37 = vld [vmem:[%s2696_s2 + $0x14] ss:$0 sm:$0xff] }
 0x64d   :  { %1915 = vrot.lane.b32.xlu0 %v1914_v39, %s2117_s4 }
 0x6b6   :  { %v1911_v40 = vpop.permute.xlu1 %1910 }
 0x6b7   :  { %v1913_v41 = vunpack.i.h.bf16 %v1911_v40  ;;  %v1912_v42 = vunpack.i.l.bf16 %v1911_v40 }
 0x6b9   :  { %v665_v0 = vsel %vm369_vm9, %v610_v23, %v1912_v42  ;;  %v666_v46 = vsel %vm369_vm9, %v613_v30, %v1913_v41  ;;  %v1970_v41 = vld [vmem:[%s2699_s5 + $0x24] ss:$8 sps:$4 sm:$0xff]  }
 0x6be   :  { %v1921_v43 = vpop.permute.xlu1 %1920 }
 0x6bf   :  { %v1916_v44 = vpop.permute.xlu0 %1915  ;;  %v1923_v47 = vunpack.i.h.bf16 %v1921_v43  ;;  %v1922_v59 = vunpack.i.l.bf16 %v1921_v43  ;;  %v1971_v43 = vld [vmem:[%s2699_s5 + $0x34] ss:$8 sps:$4 sm:$0xff]  }
 0x6c0   :  { %v1918_v58 = vunpack.i.h.bf16 %v1916_v44  ;;  %v1917_v45 = vunpack.i.l.bf16 %v1916_v44  ;;  %v1665_v44 = vld [vmem:[%s2697_s3 + $0x1] ss:$0 sm:$0xff] }
 0x6c2   :  { %v669_v52 = vsel %vm667_vm11, %v666_v46, %v1918_v58  ;;  %v668_v53 = vsel %vm667_vm11, %v665_v0, %v1917_v45 }
 0x6c3   :  { %v671_v54 = vsel %vm670_vm12, %v668_v53, %v1922_v59  ;;  %v672_v55 = vsel %vm670_vm12, %v669_v52, %v1923_v47 }
 0x6c4   :  { %v692_v56 = vpack.c.bf16 %v672_v55, %v671_v54 }
 0x6c6   :  { %1657 = vmatprep.mubr.msk.bf16.mxu1 %vm171_vm7, %v692_v56 }
 0x6c7   :  { %809 = vmatmul.mubr.bf16.vlgmr.msra.gmra.mrb[12].mxu1 %v691_v51 }
 0x79a   :  { %v810_v60 = vpop.f32.mrb[12].mxu1 }
 0x79b   :  { %v817_v61 = vadd.f32 %v810_v60, %v2228_v32  ;;  %v812_v63 = vpop.f32.mrb[13].mxu1 }
 0x79c   :  { %v813_v1 = vpop.f32.mrb[14].mxu1 }
 0x79d   :  { %v2476_v2 = vadd.f32 %v1658_v57, %v817_v61  ;;  %v818_v28 = vadd.f32 %v813_v1, %v2252_v48  ;;  %v815_v4 = vpop.f32.mrb[15].mxu1 }
 0x79f   :  { %v2479_v5 = vadd.f32 %v1658_v57, %v818_v28  ;;  %v829_v49 = vsel %vm171_vm7, %v2476_v2, 0.0 }
 0x7a0   :  { %830 = vadd.xlane.f32.xlu0 %v829_v49 }
 0x7a1   :  { %v832_v50 = vsel %vm171_vm7, %v2479_v5, 0.0 }
 0x7a2   :  { %833 = vadd.xlane.f32.xlu1 %v832_v50 }
 0x82d   :  { %v831_v51 = vpop.xlane.xlu0 %830 }
 0x82e   :  { %v835_v6 = vmul.f32 0.03125, %v831_v51 }
 0x82f   :  { %v834_v32 = vpop.xlane.xlu1 %833 }
 0x830   :  { %v837_v7 = vsub.f32 %v2476_v2, %v835_v6  ;;  %v836_v8 = vmul.f32 0.03125, %v834_v32 }
 0x832   :  { %v838_v3 = vsub.f32 %v2479_v5, %v836_v8  ;;  %v839_v48 = vmul.f32 %v837_v7, %v837_v7 }
 0x834   :  { %v841_v12 = vsel %vm171_vm7, %v839_v48, 0.0  ;;  %v840_v13 = vmul.f32 %v838_v3, %v838_v3 }
 0x835   :  { %842 = vadd.xlane.f32.xlu0 %v841_v12 }
 0x836   :  { %v844_v15 = vsel %vm171_vm7, %v840_v13, 0.0 }
 0x839   :  { %845 = vadd.xlane.f32.xlu0 %v844_v15 }
 0x8c2   :  { %v843_v18 = vpop.xlane.xlu0 %842 }
 0x8c3   :  { %v847_v20 = vmul.f32 0.03125, %v843_v18 }
 0x8c5   :  { %v849_v21 = vadd.f32 1e-05, %v847_v20 }
 0x8c6   :  { %v846_v22 = vpop.xlane.xlu0 %845 }
 0x8c7   :  { %2024 = vrsqrt.f32 %v849_v21  ;;  %v848_v23 = vmul.f32 0.03125, %v846_v22 }
 0x8c9   :  { %v850_v25 = vadd.f32 1e-05, %v848_v23 }
 0x8cb   :  { %2026 = vrsqrt.f32 %v850_v25 }
 0x8d1   :  { %v2025_v27 = vpop.eup %2024 }
 0x8d2   :  { %v853_v30 = vmul.f32 %v2025_v27, %v837_v7 }
 0x8d4   :  { %v859_v34 = vmul.f32 %v1659_v31, %v853_v30 }
 0x8d5   :  { %v2027_v33 = vpop.eup %2026 }
 0x8d6   :  { %v854_v35 = vmul.f32 %v2027_v33, %v838_v3  ;;  %v865_v39 = vadd.f32 %v1660_v37, %v859_v34 }
 0x8d8   :  { %v860_v38 = vmul.f32 %v1659_v31, %v854_v35 }
 0x8da   :  { %v866_v40 = vadd.f32 %v1660_v37, %v860_v38 }
 0x8dc   :  { %v867_v42 = vpack.c.bf16 %v866_v40, %v865_v39 }
 0x8de   :  { %1821 = vmatmul.mubr.msk.bf16.vlgmr.msra.gmra.mrb[12].mxu0 %vm171_vm7, %v867_v42 }
 0x8df   :  { %1825 = vmatpush3.bf16.msra.mxu0 %v1970_v41  ;;  %1828 = vmatprep.mubr.msk.bf16.mxu0 %vm2108_vm8, %v2107_v62 }
 0x8e0   :  { %1826 = vmatprep.subr.bf16.mxu0 %v2107_v62 }
 0x8e3   :  { %1827 = vmatpush3.bf16.msra.mxu0 %v1971_v43 }
 0x8e6   :  { %1829 = vmatmul.mubr.msk.bf16.vlgmr.msra.gmra.mrb[16].mxu0 %vm171_vm7, %v867_v42 }
 0x9b1   :  { %v926_v58 = vpop.f32.mrb[12].mxu0 }
 0x9b2   :  { %v927_v45 = vadd.f32 %v1665_v44, %v926_v58  ;;  %v1822_v0 = vpop.f32.mrb[13].mxu0 }
 0x9b3   :  { %v929_v46 = vpop.f32.mrb[14].mxu0 }
 0x9b4   :  { %v1326_v47 = vmul.f32 %v927_v45, %v927_v45  ;;  %v930_v59 = vadd.f32 %v1665_v44, %v929_v46  ;;  %v1823_v52 = vpop.f32.mrb[15].mxu0 }
 0x9b6   :  { %v1328_v53 = vmul.f32 %v1326_v47, %v927_v45  ;;  %v1327_v54 = vmul.f32 %v930_v59, %v930_v59 }
 0x9b8   :  { %v1330_v55 = vmul.f32 0.044715, %v1328_v53  ;;  %v1329_v56 = vmul.f32 %v1327_v54, %v930_v59 }
 0x9b9   :  { %v983_v57 = vpop.f32.mrb[16].mxu0 }
 0x9ba   :  { %v1332_v60 = vadd.f32 %v1330_v55, %v927_v45  ;;  %v1331_v61 = vmul.f32 0.044715, %v1329_v56  ;;  %v1830_v63 = vpop.f32.mrb[17].mxu0 }
 0x9bb   :  { %v986_v1 = vpop.f32.mrb[18].mxu0 }
 0x9bc   :  { %v1334_v28 = vmul.f32 0.7978846, %v1332_v60  ;;  %v1333_v4 = vadd.f32 %v1331_v61, %v930_v59  ;;  %v2517_v49 = vpack.c.bf16 %v986_v1, %v983_v57  ;;  %v1831_v50 = vpop.f32.mrb[19].mxu0  ;;  %v1929_v51 = vpack.i.bf16 %v986_v1, %v983_v57 }
 0x9be   :  { %2028 = vtanh.f32 %v1334_v28  ;;  %v1335_v6 = vmul.f32 0.7978846, %v1333_v4  ;;  %1930 = vrot.lane.b32.xlu1 %v1929_v51, %s2109_s11  ;;  %1840 = vmatprep.mubr.msk.bf16.mxu0 %vm369_vm9, %v2517_v49  ;;  %s2118_s11 = smov [#allocation5]  }
 0x9bf   :  { %1925 = vrot.lane.b32.xlu0 %v1929_v51, %s2110_s12  ;;  %s1587_s12 = sshll.u32 %s2118_s11, 4  ;;  %s1588_s12 = int_to_ptr.vmem [resolvable:$true] %s1587_s12 }
 0x9c0   :  { %2030 = vtanh.f32 %v1335_v6  ;;  %p2085_p6 = scmp.lt.s32.totalorder %s1588_s12, %s1588_s12 }
 0x9c2   :  { %1935 = vrot.lane.b32.xlu1 %v1929_v51, %s2111_s23  ;;  %s2080_s23 = scalar_lea.vmem %s1588_s12, 256 }
 0x9c3   :  { %p2081_p5 = scmp.ne.s32.totalorder %s1588_s12, %s2080_s23  ;;  %p2086_p7 = scmp.lt.s32.totalorder %s2080_s23, %s2080_s23 }
 0x9c5   :  { %p2087_p8 = por %p2086_p7, %p2085_p6 }
 0x9c6   :  { %1018 = vrot.lane.b32.xlu1 %v2517_v49, %s2112_s13 }
 0x9c7   :  { %p2088_p9 = pnand %p2087_p8, %p2081_p5 }
 0x9c8   :  { %v2029_v32 = vpop.eup %2028 }
 0x9c9   :  { %v1338_v7 = vadd.f32 1.0, %v2029_v32 }
 0x9ca   :  { %v2031_v8 = vpop.eup %2030 }
 0x9cb   :  { %v1340_v3 = vmul.f32 0.5, %v1338_v7  ;;  %v1339_v48 = vadd.f32 1.0, %v2031_v8 }
 0x9cd   :  { %v1341_v12 = vmul.f32 0.5, %v1339_v48  ;;  %v2526_v13 = vmul.f32 %v1340_v3, %v927_v45 }
 0x9cf   :  { %v2528_v15 = vmul.f32 %v1341_v12, %v930_v59 }
 0x9d1   :  { %v1344_v16 = vpack.c.bf16 %v2528_v15, %v2526_v13 }
 0xa30   :  { %v1931_v17 = vpop.permute.xlu1 %1930 }
 0xa31   :  { %v1933_v18 = vunpack.i.h.bf16 %v1931_v17  ;;  %v1932_v20 = vunpack.i.l.bf16 %v1931_v17  ;;  %v1926_v21 = vpop.permute.xlu0 %1925 }
 0xa32   :  { %v1928_v22 = vunpack.i.h.bf16 %v1926_v21  ;;  %v1927_v23 = vunpack.i.l.bf16 %v1926_v21 }
 0xa33   :  { %v2532_v25 = vpack.c.bf16 %v1933_v18, %v1932_v20 }
 0xa34   :  { %v2534_v27 = vpack.c.bf16 %v1928_v22, %v1927_v23  ;;  %v1936_v30 = vpop.permute.xlu1 %1935 }
 0xa35   :  { %v1938_v31 = vunpack.i.h.bf16 %v1936_v30  ;;  %v1937_v33 = vunpack.i.l.bf16 %v1936_v30  ;;  %1022 = vrot.lane.b32.xlu1 %v2532_v25, %s2112_s13 }
 0xa36   :  { %1020 = vrot.lane.b32.xlu0 %v2534_v27, %s2112_s13 }
 0xa37   :  { %v2540_v34 = vpack.c.bf16 %v1938_v31, %v1937_v33 }
 0xa38   :  { %v1019_v35 = vpop.permute.xlu1 %1018 }
 0xa39   :  { %v1039_v37 = vsel %vm369_vm9, %v1019_v35, 0  ;;  %1876 = vmatprep.subr.msk.bf16.mxu0 %vm369_vm9, %v1019_v35 }
 0xa3a   :  { %1024 = vrot.lane.b32.xlu0 %v2540_v34, %s2112_s13  ;;  %1833 = vmatpush3.bf16.xpose.msra.mxu0 %v1039_v37 }
 0xaa7   :  { %v1023_v40 = vpop.permute.xlu1 %1022 }
 0xaa8   :  { %v1021_v38 = vpop.permute.xlu0 %1020  ;;  %v1045_v41 = vsel %vm369_vm9, %v1023_v40, 0 }
 0xaa9   :  { %v1042_v39 = vsel %vm369_vm9, %v1021_v38, 0  ;;  %1877 = vmatprep.subr.msk.bf16.mxu0 %vm369_vm9, %v1021_v38 }
 0xaaa   :  { %1835 = vmatpush3.bf16.xpose.msra.mxu0 %v1042_v39 }
 0xaab   :  { %1878 = vmatprep.subr.msk.bf16.mxu0 %vm369_vm9, %v1023_v40 }
 0xaac   :  { %v1025_v42 = vpop.permute.xlu0 %1024 }
 0xaad   :  { %v1048_v43 = vsel %vm369_vm9, %v1025_v42, 0 }
 0xab2   :  { %1837 = vmatpush3.bf16.xpose.msra.mxu0 %v1045_v41 }
 0xab3   :  { %1879 = vmatprep.subr.msk.bf16.mxu0 %vm369_vm9, %v1025_v42 }
 0xaba   :  { %1839 = vmatpush3.bf16.xpose.msra.mxu0 %v1048_v43 }
 0xabb   :  { %1864 = vmatprep.subr.bf16.mxu0 %v2107_v62 }
 0xac1   :  { %1841 = vmatmul.mubr.msk.bf16.vlgmr.msra.gmra.mrb[20].mxu0 %vm369_vm9, %v2534_v27 }
 0xac2   :  { %1844 = vmatprep.mubr.msk.bf16.mxu0 %vm369_vm9, %v2532_v25 }
 0xac9   :  { %1845 = vmatmul.mubr.msk.bf16.gmra.mrb[24].mxu0 %vm369_vm9, %v2540_v34 }
 0xaca   :  { %1868 = vmatprep.mubr.msk.bf16.mxu0 %vm2108_vm8, %v2107_v62 }
 0xb94   :  { %v1842_v44 = vpop.f32.mrb[20].mxu0 }
 0xb95   :  { %v1093_v58 = vadd.f32 %v1842_v44, %v2338_v9  ;;  %v1084_v45 = vpop.f32.mrb[21].mxu0 }
 0xb96   :  { %v1085_v0 = vadd.f32 %v1084_v45, %v2343_v10  ;;  %v1843_v46 = vpop.f32.mrb[22].mxu0 }
 0xb97   :  { %v1087_v47 = vpop.f32.mrb[23].mxu0  ;;  %v1121_v59 = vsel %vm459_vm10, %v1093_v58, -inf  ;;  %v1096_v55 = vadd.f32 %v1843_v46, %v2356_v19 }
 0xb98   :  { %v1088_v52 = vadd.f32 %v1087_v47, %v2349_v14  ;;  %1122 = vmax.xlane.f32.xlu0 %v1121_v59  ;;  %v1115_v53 = vsel %vm459_vm10, %v1085_v0, -inf }
 0xb99   :  { %1116 = vmax.xlane.f32.xlu1 %v1115_v53  ;;  %v1124_v61 = vsel %vm459_vm10, %v1096_v55, -inf }
 0xb9a   :  { %v1118_v54 = vsel %vm459_vm10, %v1088_v52, -inf }
 0xb9c   :  { %v1846_v56 = vpop.f32.mrb[24].mxu0  ;;  %1119 = vmax.xlane.f32.xlu0 %v1118_v54 }
 0xb9d   :  { %v1100_v9 = vpop.f32.mrb[25].mxu0  ;;  %v1109_v63 = vadd.f32 %v1846_v56, %v2370_v26 }
 0xb9e   :  { %v1101_v57 = vadd.f32 %v1100_v9, %v2365_v24  ;;  %v1847_v10 = vpop.f32.mrb[26].mxu0 }
 0xb9f   :  { %v1103_v60 = vpop.f32.mrb[27].mxu0  ;;  %v1112_v19 = vadd.f32 %v1847_v10, %v2383_v36  ;;  %v1133_v4 = vsel %vm459_vm10, %v1109_v63, -inf }
 0xba0   :  { %v1104_v14 = vadd.f32 %v1103_v60, %v2375_v29  ;;  %1125 = vmax.xlane.f32.xlu0 %v1124_v61  ;;  %v1127_v1 = vsel %vm459_vm10, %v1101_v57, -inf }
 0xba1   :  { %1128 = vmax.xlane.f32.xlu1 %v1127_v1  ;;  %v1136_v24 = vsel %vm459_vm10, %v1112_v19, -inf }
 0xba2   :  { %v1130_v28 = vsel %vm459_vm10, %v1104_v14, -inf }
 0xba4   :  { %1131 = vmax.xlane.f32.xlu0 %v1130_v28 }
 0xba5   :  { %1134 = vmax.xlane.f32.xlu1 %v1133_v4 }
 0xba8   :  { %1137 = vmax.xlane.f32.xlu0 %v1136_v24 }
 0xbb6   :  { %1207 = vrot.lane.b32.xlu1 %v2517_v49, %s2113_s17 }
 0xc25   :  { %v1123_v26 = vpop.xlane.xlu0 %1122 }
 0xc26   :  { %v1141_v29 = vsub.f32 %v1093_v58, %v1123_v26  ;;  %v1117_v50 = vpop.xlane.xlu1 %1116 }
 0xc27   :  { %v1139_v51 = vsub.f32 %v1085_v0, %v1117_v50 }
 0xc28   :  { %v1151_v6 = vmul.f32 1.442695, %v1141_v29 }
 0xc29   :  { %v1147_v32 = vmul.f32 1.442695, %v1139_v51  ;;  %v1120_v7 = vpop.xlane.xlu0 %1119 }
 0xc2a   :  { %2032 = vpow2.f32 %v1151_v6  ;;  %v1140_v36 = vsub.f32 %v1088_v52, %v1120_v7 }
 0xc2b   :  { %2034 = vpow2.f32 %v1147_v32 }
 0xc2c   :  { %v1149_v12 = vmul.f32 1.442695, %v1140_v36 }
 0xc2d   :  { %v1126_v8 = vpop.xlane.xlu0 %1125 }
 0xc2e   :  { %v1142_v3 = vsub.f32 %v1096_v55, %v1126_v8  ;;  %v1129_v48 = vpop.xlane.xlu1 %1128 }
 0xc2f   :  { %v1143_v18 = vsub.f32 %v1101_v57, %v1129_v48 }
 0xc30   :  { %v1153_v17 = vmul.f32 1.442695, %v1142_v3 }
 0xc31   :  { %v1132_v20 = vpop.xlane.xlu0 %1131  ;;  %v1155_v30 = vmul.f32 1.442695, %v1143_v18 }
 0xc32   :  { %2036 = vpow2.f32 %v1153_v17  ;;  %v1135_v21 = vpop.xlane.xlu1 %1134  ;;  %v1144_v23 = vsub.f32 %v1104_v14, %v1132_v20 }
 0xc33   :  { %v1145_v49 = vsub.f32 %v1109_v63, %v1135_v21  ;;  %2038 = vpow2.f32 %v1149_v12  ;;  %v1972_v21 = vld [vmem:[%s2709_s18 + $0x50] sm:$0xff]  }
 0xc34   :  { %v2579_v22 = vpop.eup %2032  ;;  %v1157_v40 = vmul.f32 1.442695, %v1144_v23  ;;  %v1975_v23 = vld [vmem:[%s2709_s18 + $0x68] sm:$0xff]  }
 0xc35   :  { %v1159_v31 = vmul.f32 1.442695, %v1145_v49  ;;  %v1138_v33 = vpop.xlane.xlu0 %1137  ;;  %v1169_v35 = vsel %vm459_vm10, %v2579_v22, 0.0  ;;  %v2035_v37 = vpop.eup %2034  ;;  %v1973_v49 = vld [vmem:[%s2709_s18 + $0x58] sm:$0xff]  }
 0xc36   :  { %v1146_v38 = vsub.f32 %v1112_v19, %v1138_v33  ;;  %1170 = vadd.xlane.f32.xlu1 %v1169_v35  ;;  %v1208_v39 = vpop.permute.xlu1 %1207  ;;  %v1163_v42 = vsel %vm459_vm10, %v2035_v37, 0.0  ;;  %v1978_v33 = vld [vmem:[%s2709_s18 + $0x80] sm:$0xff]   ;;  %v1979_v35 = vld [vmem:[%s2709_s18 + $0x88] sm:$0xff]  }
 0xc37   :  { %2040 = vpow2.f32 %v1159_v31  ;;  %1848 = vmatprep.subr.bf16.mxu1 %v1208_v39  ;;  %v1977_v31 = vld [vmem:[%s2709_s18 + $0x78] sm:$0xff]  }
 0xc38   :  { %v1161_v41 = vmul.f32 1.442695, %v1146_v38  ;;  %1849 = vmatpush3.bf16.msra.mxu1 %v1208_v39  ;;  %2042 = vpow2.f32 %v1155_v30  ;;  %v1976_v30 = vld [vmem:[%s2709_s18 + $0x70] sm:$0xff]  }
 0xc3a   :  { %2044 = vpow2.f32 %v1161_v41  ;;  %1164 = vadd.xlane.f32.xlu1 %v1163_v42 }
 0xc3b   :  { %2046 = vpow2.f32 %v1157_v40 }
 0xc3c   :  { %v2037_v43 = vpop.eup %2036 }
 0xc3d   :  { %v1172_v44 = vsel %vm459_vm10, %v2037_v43, 0.0  ;;  %v2039_v58 = vpop.eup %2038 }
 0xc3e   :  { %1173 = vadd.xlane.f32.xlu0 %v1172_v44  ;;  %v1166_v0 = vsel %vm459_vm10, %v2039_v58, 0.0 }
 0xc41   :  { %v2585_v45 = vpop.eup %2040 }
 0xc42   :  { %1167 = vadd.xlane.f32.xlu0 %v1166_v0  ;;  %v1181_v46 = vsel %vm459_vm10, %v2585_v45, 0.0  ;;  %v2043_v47 = vpop.eup %2042 }
 0xc43   :  { %1182 = vadd.xlane.f32.xlu1 %v1181_v46  ;;  %v1175_v54 = vsel %vm459_vm10, %v2043_v47, 0.0 }
 0xc44   :  { %v2045_v59 = vpop.eup %2044 }
 0xc45   :  { %v1184_v52 = vsel %vm459_vm10, %v2045_v59, 0.0  ;;  %v2047_v53 = vpop.eup %2046 }
 0xc46   :  { %1185 = vadd.xlane.f32.xlu0 %v1184_v52  ;;  %v1178_v55 = vsel %vm459_vm10, %v2047_v53, 0.0 }
 0xc47   :  { %1176 = vadd.xlane.f32.xlu1 %v1175_v54 }
 0xc4a   :  { %1179 = vadd.xlane.f32.xlu0 %v1178_v55 }
 0xc58   :  { %1211 = vrot.lane.b32.xlu1 %v2532_v25, %s2113_s17 }
 0xc5c   :  { %1213 = vrot.lane.b32.xlu1 %v2540_v34, %s2113_s17 }
 0xc60   :  { %1209 = vrot.lane.b32.xlu0 %v2534_v27, %s2113_s17 }
 0xcc3   :  { %v1171_v56 = vpop.xlane.xlu1 %1170 }
 0xcc7   :  { %v1165_v9 = vpop.xlane.xlu1 %1164 }
 0xcc8   :  { %2048 = vrcp.f32 %v1165_v9 }
 0xccb   :  { %v1174_v57 = vpop.xlane.xlu0 %1173 }
 0xccf   :  { %v1168_v10 = vpop.xlane.xlu0 %1167 }
 0xcd0   :  { %2050 = vrcp.f32 %v1168_v10  ;;  %v1183_v60 = vpop.xlane.xlu1 %1182 }
 0xcd1   :  { %2052 = vrcp.f32 %v1174_v57 }
 0xcd2   :  { %2054 = vrcp.f32 %v1171_v56  ;;  %v2049_v25 = vpop.eup %2048 }
 0xcd3   :  { %v1186_v61 = vpop.xlane.xlu0 %1185  ;;  %v1195_v19 = vmul.f32 %v2049_v25, %v2035_v37  ;;  %v1980_v37 = vld [vmem:[%s2709_s18 + $0x90] sm:$0xff]  }
 0xcd4   :  { %v1177_v63 = vpop.xlane.xlu1 %1176 }
 0xcd5   :  { %2056 = vrcp.f32 %v1177_v63 }
 0xcd7   :  { %v1180_v14 = vpop.xlane.xlu0 %1179 }
 0xcd8   :  { %2058 = vrcp.f32 %v1180_v14  ;;  %v1212_v34 = vpop.permute.xlu1 %1211 }
 0xcd9   :  { %2060 = vrcp.f32 %v1186_v61 }
 0xcda   :  { %v2051_v1 = vpop.eup %2050  ;;  %2062 = vrcp.f32 %v1183_v60 }
 0xcdb   :  { %v1210_v28 = vpop.permute.xlu0 %1209  ;;  %v1196_v27 = vmul.f32 %v2051_v1, %v2039_v58  ;;  %v2053_v24 = vpop.eup %2052 }
 0xcdc   :  { %1850 = vmatprep.subr.bf16.mxu1 %v1210_v28  ;;  %v2055_v26 = vpop.eup %2054  ;;  %v1214_v50 = vpop.permute.xlu1 %1213  ;;  %v1198_v6 = vmul.f32 %v2053_v24, %v2037_v43  ;;  %v1981_v43 = vld [vmem:[%s2709_s18 + $0x98] sm:$0xff]  }
 0xcdd   :  { %1851 = vmatpush3.bf16.msra.mxu1 %v1210_v28  ;;  %v1203_v4 = vpack.c.bf16 %v1196_v27, %v1195_v19  ;;  %v1197_v7 = vmul.f32 %v2055_v26, %v2579_v22  ;;  %v1974_v22 = vld [vmem:[%s2709_s18 + $0x60] sm:$0xff]   ;;  %v1715_v28 = vld [vmem:[%s2696_s2 + $0x15] ss:$0 sm:$0xff] }
 0xcde   :  { %1852 = vmatprep.subr.bf16.mxu1 %v1212_v34 }
 0xcdf   :  { %1856 = vmatprep.mubr.msk.bf16.mxu1 %vm459_vm10, %v1203_v4  ;;  %v2057_v29 = vpop.eup %2056  ;;  %v1204_v8 = vpack.c.bf16 %v1198_v6, %v1197_v7 }
 0xce0   :  { %v1199_v36 = vmul.f32 %v2057_v29, %v2043_v47 }
 0xce1   :  { %1853 = vmatpush3.bf16.msra.mxu1 %v1212_v34 }
 0xce2   :  { %v2059_v51 = vpop.eup %2058  ;;  %1854 = vmatprep.subr.bf16.mxu1 %v1214_v50 }
 0xce3   :  { %v1200_v32 = vmul.f32 %v2059_v51, %v2047_v53  ;;  %v2061_v3 = vpop.eup %2060 }
 0xce4   :  { %v2063_v12 = vpop.eup %2062  ;;  %v1202_v17 = vmul.f32 %v2061_v3, %v2045_v59 }
 0xce5   :  { %1855 = vmatpush3.bf16.msra.mxu1 %v1214_v50  ;;  %v1205_v48 = vpack.c.bf16 %v1200_v32, %v1199_v36  ;;  %v1201_v18 = vmul.f32 %v2063_v12, %v2585_v45  ;;  %v1983_v12 = vld [vmem:[%s2710_s25 + $0x8] sm:$0xff]  }
 0xce6   :  { %1430 = vmatprep.subr.bf16.mxu1 %v2114_v11 }
 0xce7   :  { %v1206_v20 = vpack.c.bf16 %v1202_v17, %v1201_v18 }
 0xce8   :  { %1857 = vmatmul.mubr.msk.bf16.vlgmr.msra.gmra.mrb[16].mxu1 %vm459_vm10, %v1204_v8 }
 0xce9   :  { %1860 = vmatprep.mubr.msk.bf16.mxu1 %vm459_vm10, %v1205_v48  ;;  %1431 = vmatpush1.bf16.msra.mxu1 %v1972_v21  ;;  %v1982_v48 = vld [vmem:[%s2710_s25] sm:$0xff]  }
 0xcea   :  { %1432 = vmatprep.subr.bf16.mxu1 %v2114_v11  ;;  %1865 = vmatpush3.bf16.msra.mxu0 %v1982_v48 }
 0xceb   :  { %1866 = vmatprep.subr.bf16.mxu0 %v2107_v62 }
 0xced   :  { %1433 = vmatpush1.bf16.msra.mxu1 %v1973_v49 }
 0xcee   :  { %1434 = vmatprep.subr.bf16.mxu1 %v2114_v11  ;;  %1867 = vmatpush3.bf16.msra.mxu0 %v1983_v12 }
 0xcf0   :  { %1861 = vmatmul.mubr.msk.bf16.gmra.mrb[20].mxu1 %vm459_vm10, %v1206_v20 }
 0xcf1   :  { %1435 = vmatpush1.bf16.msra.mxu1 %v1974_v22 }
 0xcf2   :  { %1436 = vmatprep.subr.bf16.mxu1 %v2114_v11 }
 0xcf5   :  { %1437 = vmatpush1.bf16.msra.mxu1 %v1975_v23 }
 0xcf6   :  { %1438 = vmatprep.subr.bf16.mxu1 %v2114_v11 }
 0xcf9   :  { %1439 = vmatpush1.bf16.msra.mxu1 %v1976_v30 }
 0xcfa   :  { %1440 = vmatprep.subr.bf16.mxu1 %v2114_v11 }
 0xcfd   :  { %1441 = vmatpush1.bf16.msra.mxu1 %v1977_v31  ;;  %v1716_v31 = vld [vmem:[%s2696_s2 + $0x16] ss:$0 sm:$0xff] }
 0xcfe   :  { %1442 = vmatprep.subr.bf16.mxu1 %v2114_v11 }
 0xd01   :  { %1443 = vmatpush1.bf16.msra.mxu1 %v1978_v33 }
 0xd02   :  { %1444 = vmatprep.subr.bf16.mxu1 %v2114_v11 }
 0xd05   :  { %1445 = vmatpush1.bf16.msra.mxu1 %v1979_v35 }
 0xd06   :  { %1446 = vmatprep.subr.bf16.mxu1 %v2114_v11 }
 0xd09   :  { %1447 = vmatpush1.bf16.msra.mxu1 %v1980_v37  ;;  %v1717_v37 = vld [vmem:[%s2696_s2 + $0x17] ss:$0 sm:$0xff] }
 0xd0a   :  { %1448 = vmatprep.subr.bf16.mxu1 %v2114_v11 }
 0xd0d   :  { %1449 = vmatpush1.bf16.msra.mxu1 %v1981_v43 }
 0xdbb   :  { %v1858_v38 = vpop.f32.mrb[16].mxu1 }
 0xdbc   :  { %v1265_v39 = vpop.f32.mrb[17].mxu1 }
 0xdbd   :  { %v1859_v40 = vpop.f32.mrb[18].mxu1 }
 0xdbe   :  { %v1939_v41 = vpack.i.bf16 %v1859_v40, %v1858_v38  ;;  %v1268_v42 = vpop.f32.mrb[19].mxu1 }
 0xdc0   :  { %1940 = vrot.lane.b32.xlu1 %v1939_v41, %s2115_s30 }
 0xdc3   :  { %v1862_v44 = vpop.f32.mrb[20].mxu1 }
 0xdc4   :  { %v1281_v58 = vpop.f32.mrb[21].mxu1 }
 0xdc5   :  { %v1863_v45 = vpop.f32.mrb[22].mxu1 }
 0xdc6   :  { %v1949_v0 = vpack.i.bf16 %v1863_v45, %v1862_v44  ;;  %v1284_v46 = vpop.f32.mrb[23].mxu1 }
 0xdc7   :  { %v1944_v47 = vpack.i.bf16 %v1284_v46, %v1281_v58 }
 0xdc8   :  { %1950 = vrot.lane.b32.xlu1 %v1949_v0, %s2116_s9 }
 0xdc9   :  { %1945 = vrot.lane.b32.xlu0 %v1944_v47, %s2117_s4 }
 0xe32   :  { %v1941_v11 = vpop.permute.xlu1 %1940 }
 0xe33   :  { %v1943_v59 = vunpack.i.h.bf16 %v1941_v11  ;;  %v1942_v52 = vunpack.i.l.bf16 %v1941_v11 }
 0xe35   :  { %v1320_v9 = vsel %vm369_vm9, %v1265_v39, %v1942_v52  ;;  %v1321_v57 = vsel %vm369_vm9, %v1268_v42, %v1943_v59 }
 0xe3a   :  { %v1951_v53 = vpop.permute.xlu1 %1950 }
 0xe3b   :  { %v1946_v54 = vpop.permute.xlu0 %1945  ;;  %v1953_v10 = vunpack.i.h.bf16 %v1951_v53  ;;  %v1952_v60 = vunpack.i.l.bf16 %v1951_v53 }
 0xe3c   :  { %v1948_v55 = vunpack.i.h.bf16 %v1946_v54  ;;  %v1947_v56 = vunpack.i.l.bf16 %v1946_v54 }
 0xe3e   :  { %v1323_v61 = vsel %vm667_vm11, %v1321_v57, %v1948_v55  ;;  %v1322_v63 = vsel %vm667_vm11, %v1320_v9, %v1947_v56 }
 0xe3f   :  { %v1324_v14 = vsel %vm670_vm12, %v1322_v63, %v1952_v60  ;;  %v1325_v25 = vsel %vm670_vm12, %v1323_v61, %v1953_v10 }
 0xe40   :  { %v1345_v1 = vpack.c.bf16 %v1325_v25, %v1324_v14 }
 0xe42   :  { %1714 = vmatprep.mubr.msk.bf16.mxu1 %vm171_vm7, %v1345_v1 }
 0xe43   :  { %1463 = vmatmul.mubr.bf16.vlgmr.msra.gmra.mrb[24].mxu1 %v1344_v16 }
 0xf16   :  { %v1464_v34 = vpop.f32.mrb[24].mxu1 }
 0xf17   :  { %v1471_v19 = vadd.f32 %v1464_v34, %v2476_v2  ;;  %v1466_v27 = vpop.f32.mrb[25].mxu1 }
 0xf18   :  { %v1467_v4 = vpop.f32.mrb[26].mxu1 }
 0xf19   :  { %v1472_v24 = vadd.f32 %v1467_v4, %v2479_v5  ;;  %v1469_v26 = vpop.f32.mrb[27].mxu1  ;;  %v1477_v29 = vadd.f32 %v1715_v28, %v1471_v19 }
 0xf1b   :  { %v1481_v50 = vsel %vm171_vm7, %v1477_v29, 0.0  ;;  %v1478_v51 = vadd.f32 %v1715_v28, %v1472_v24 }
 0xf1c   :  { %1482 = vadd.xlane.f32.xlu0 %v1481_v50 }
 0xf1d   :  { %v1484_v13 = vsel %vm171_vm7, %v1478_v51, 0.0 }
 0xf1e   :  { %1485 = vadd.xlane.f32.xlu1 %v1484_v13 }
 0xfa9   :  { %v1483_v15 = vpop.xlane.xlu0 %1482 }
 0xfaa   :  { %v1487_v16 = vmul.f32 0.03125, %v1483_v15 }
 0xfab   :  { %v1486_v6 = vpop.xlane.xlu1 %1485 }
 0xfac   :  { %v1489_v32 = vsub.f32 %v1477_v29, %v1487_v16  ;;  %v1488_v7 = vmul.f32 0.03125, %v1486_v6 }
 0xfae   :  { %v1490_v36 = vsub.f32 %v1478_v51, %v1488_v7  ;;  %v1491_v2 = vmul.f32 %v1489_v32, %v1489_v32 }
 0xfb0   :  { %v1493_v8 = vsel %vm171_vm7, %v1491_v2, 0.0  ;;  %v1492_v3 = vmul.f32 %v1490_v36, %v1490_v36 }
 0xfb1   :  { %1494 = vadd.xlane.f32.xlu0 %v1493_v8 }
 0xfb2   :  { %v1496_v5 = vsel %vm171_vm7, %v1492_v3, 0.0 }
 0xfb5   :  { %1497 = vadd.xlane.f32.xlu0 %v1496_v5 }
0x103e   :  { %v1495_v17 = vpop.xlane.xlu0 %1494 }
0x103f   :  { %v1499_v18 = vmul.f32 0.03125, %v1495_v17 }
0x1041   :  { %v1501_v20 = vadd.f32 1e-05, %v1499_v18 }
0x1042   :  { %v1498_v21 = vpop.xlane.xlu0 %1497 }
0x1043   :  { %2064 = vrsqrt.f32 %v1501_v20  ;;  %v1500_v49 = vmul.f32 0.03125, %v1498_v21 }
0x1045   :  { %v1502_v22 = vadd.f32 1e-05, %v1500_v49 }
0x1047   :  { %2066 = vrsqrt.f32 %v1502_v22 }
0x104d   :  { %v2065_v23 = vpop.eup %2064 }
0x104e   :  { %v1505_v30 = vmul.f32 %v2065_v23, %v1489_v32 }
0x1050   :  { %v1511_v33 = vmul.f32 %v1716_v31, %v1505_v30 }
0x1051   :  { %v2067_v62 = vpop.eup %2066 }
0x1052   :  { %v1506_v35 = vmul.f32 %v2067_v62, %v1490_v36  ;;  %v1517_v39 = vadd.f32 %v1717_v37, %v1511_v33 }
0x1054   :  { %v1512_v38 = vmul.f32 %v1716_v31, %v1506_v35 }
0x1056   :  { %v1518_v40 = vadd.f32 %v1717_v37, %v1512_v38 }
0x1058   :  { %v1519_v41 = vpack.c.bf16 %v1518_v40, %v1517_v39 }
0x105a   :  { %1869 = vmatmul.mubr.msk.bf16.vlgmr.msra.gmra.mrb[28].mxu0 %vm171_vm7, %v1519_v41 }
0x112d   :  { %v1573_v42 = vpop.f32.mrb[28].mxu0 }
0x112e   :  { %1580 = vst [vmem:[#allocation5] sm:$0xff] %v1573_v42  ;;  %v1870_v43 = vpop.f32.mrb[29].mxu0 }
0x112f   :  { %v1576_v44 = vpop.f32.mrb[30].mxu0 }
0x1130   :  { %1581 = vst [vmem:[#allocation5 + $0x8] sm:$0xff] %v1576_v44  ;;  %v1871_v58 = vpop.f32.mrb[31].mxu0 }
0x1131   :  { %2091 = shalt.err (!%p2088_p9)
}
0x1132   :  { %s2711_s17 = sld [smem:[#allocation10_spill]] }
0x1138   :  { %s2092_s27 = scalar_lea.hbm %s2711_s17, 256 }
0x1139   :  { %p2093_p10 = scmp.ne.s32.totalorder %s2711_s17, %s2092_s27  ;;  %p2096_p11 = scmp.lt.u32.totalorder %s2092_s27, %s2711_s17 }
0x113b   :  { %p2098_p12 = pnand %p2096_p11, %p2093_p10 }
0x113d   :  { %2101 = shalt.err (!%p2098_p12)
}
0x113e   :  { %s2119_s22 = smov 128  }
0x113f   :  { %1593 = dma.vmem_to_hbm [thread:$0]  %s1588_s12, 256, %s2711_s17, [#allocation3], %s2119_s22, %s2119_s22, %s2115_s30  }
0x1140   :  { %2104 = dma.done.wait [#allocation3], 256  }
0x1141   :  { %2105 = vsyncadd [#allocation3], 4294967040 }
0x1142   :  { %1597 = vsyncpa [#allocation3], 1 }
0x1143   :  { %1598 = vsyncpa [#allocation4], 1 }

</bundles_post_ra>
